<compile_context>
chip_gen: v7x
topology: tpu7x:2x2x1
jax: 0.10.0
libtpu: 0.0.40
codegen_flags: <defaults>
</compile_context>

<pallas_src>
import functools

import jax
import jax.numpy as jnp
from jax.experimental import pallas as pl
from jax.experimental.pallas import tpu as pltpu

LN_EPS = 1e-5


def _gelu(x):
    # tanh GELU: the transcendental goes to the otherwise-idle EUP slot.
    return jax.nn.gelu(x, approximate=True)


def _gelu_exact(x):
    # torch.nn.GELU() default (erf) -- used only by the pure-JAX reference.
    return jax.nn.gelu(x, approximate=False)


def _layer_norm(x, gamma, beta):
    mu = jnp.mean(x, axis=-1, keepdims=True)
    var = jnp.mean((x - mu) ** 2, axis=-1, keepdims=True)
    return (x - mu) * jax.lax.rsqrt(var + LN_EPS) * gamma + beta


def _round_up(x, m):
    return (x + m - 1) // m * m


def _device_kind():
    try:
        return jax.devices()[0].device_kind.lower()
    except Exception:
        return ""


def _pick_vmem_limit(kind):
    if "v7" in kind or "tpu7" in kind:
        return 48 * 1024 * 1024            # v7x: 64 MiB physical VMEM
    if any(g in kind for g in ("v4", "v5", "v6")):
        return 96 * 1024 * 1024            # 128 MiB physical VMEM
    return None                            # unknown generation: compiler default


def _pick_tk(K, max_tk=16):
    """Largest K-chunk <= max_tk that divides K and is a multiple of 8."""
    if K <= max_tk:
        return K
    for t in range(max_tk, 7, -1):
        if K % t == 0 and t % 8 == 0:
            return t
    return K   # no friendly divisor: single chunk (reshape may relayout)


def dec_layer_kernel(
    hV_ref, hE_ref, mattend_ref, maskV_ref,
    w1v_ref, w1e_ref, b1_ref,
    w2_ref, b2_ref,
    w3_ref, b3_ref,                  # 1/scale already folded in
    g1_ref, be1_ref,
    win_ref, bin_ref,
    wout_ref, bout_ref,
    g2_ref, be2_ref,
    out_ref,
    hvb_sc, s_sc, msum_sc,
    *, ew_dtype,
):
    TM, H = hV_ref.shape
    TK = hE_ref.shape[1]
    cdt = w1v_ref.dtype                           # matmul operand dtype (bf16)
    k = pl.program_id(1)
    last_k = pl.num_programs(1) - 1

    # ----- per-row-tile init (first K chunk) -----
    @pl.when(k == 0)
    def _():
        # Node part of W1 is shared across all K neighbors: compute once,
        # with the bias pre-added, and keep it in scratch.
        hvb_sc[...] = (
            jnp.dot(hV_ref[...].astype(cdt), w1v_ref[...],
                    preferred_element_type=jnp.float32) + b1_ref[0])
        s_sc[...] = jnp.zeros_like(s_sc)
        msum_sc[...] = jnp.zeros_like(msum_sc)

    # ----- message MLP on this K chunk -----
    # (TM, TK, Cin) -> (TM*TK, Cin): layout-free when TK % 8 == 0 (or TK == K).
    hE2d = hE_ref[...].reshape(TM * TK, hE_ref.shape[2])          # bf16
    he = jnp.dot(hE2d, w1e_ref[...],
                 preferred_element_type=jnp.float32)              # [TM*TK, H] f32
    h = _gelu((he.reshape(TM, TK, H)
               + hvb_sc[...][:, None, :]).astype(ew_dtype))       # [TM, TK, H] ew
    h = jnp.dot(h.reshape(TM * TK, H).astype(cdt), w2_ref[...],
                preferred_element_type=jnp.float32) + b2_ref[0]
    h = _gelu(h.astype(ew_dtype)).reshape(TM, TK, H)              # [TM, TK, H] ew

    # Masked partial sum over this K chunk (mask is 0/1, so the ew multiply is
    # exact); accumulate in f32.
    m = mattend_ref[...]                                          # [TM, TK, 1] f32
    hm = h * m.astype(ew_dtype)
    s_sc[...] += jnp.sum(hm.astype(jnp.float32), axis=1)          # [TM, H]
    msum_sc[...] += jnp.sum(m[..., 0], axis=1, keepdims=True)     # [TM, 1]

    # ----- finalize (last K chunk): W3, norm1, FFN, norm2, node mask -----
    @pl.when(k == last_k)
    def _():
        hV = hV_ref[...]                                          # [TM, H] f32
        dh = (jnp.dot(s_sc[...].astype(cdt), w3_ref[...],
                      preferred_element_type=jnp.float32)
              + msum_sc[...] * b3_ref[0])                         # 1/scale folded
        x = _layer_norm(hV + dh, g1_ref[0], be1_ref[0])

        ff = _gelu((jnp.dot(x.astype(cdt), win_ref[...],
                            preferred_element_type=jnp.float32)
                    + bin_ref[0]).astype(ew_dtype))
        ff = jnp.dot(ff.astype(cdt), wout_ref[...],
                     preferred_element_type=jnp.float32) + bout_ref[0]

        y = _layer_norm(x + ff, g2_ref[0], be2_ref[0])
        out_ref[...] = (y * maskV_ref[...]).astype(out_ref.dtype)


def dec_layer(h_V, h_E, mask_V, mask_attend, params, *, scale=30.0, tm=256,
              tk=None, matmul_dtype=jnp.bfloat16, ew_dtype=None):
    B, N, H = h_V.shape
    K, Cin = h_E.shape[2], h_E.shape[3]
    R = B * N

    kind = _device_kind()
    if ew_dtype is None:
        # v5e has no bf16 VPU/EUP path -> keep elementwise math f32 there.
        ew_dtype = jnp.float32 if "v5" in kind else jnp.bfloat16
    vmem_limit = _pick_vmem_limit(kind)

    # Row tile: multiple of 8 (sublane), no larger than the padded row count,
    # and small enough that the row axis has >= ~4 grid steps (DMA overlap +
    # megacore sharding on v7x).
    tm = max(8, min(tm, _round_up(R, 8)))
    tm = min(tm, max(8, _round_up(_round_up(R, 8) // 4, 8)))
    tm = _round_up(tm, 8)
    Rp = _round_up(R, tm)
    pad = Rp - R

    if tk is None:
        tk = _pick_tk(K)

    hV2 = h_V.reshape(R, H).astype(jnp.float32)
    hE3 = h_E.reshape(R, K, Cin)
    ma3 = mask_attend.reshape(R, K, 1).astype(jnp.float32)
    mv2 = mask_V.reshape(R, 1).astype(jnp.float32)
    if pad:
        hV2 = jnp.pad(hV2, ((0, pad), (0, 0)))
        hE3 = jnp.pad(hE3, ((0, pad), (0, 0), (0, 0)))
        ma3 = jnp.pad(ma3, ((0, pad), (0, 0), (0, 0)))
        mv2 = jnp.pad(mv2, ((0, pad), (0, 0)))
    hE3 = hE3.astype(matmul_dtype)   # bf16 halves the dominant HBM DMA stream
    # TODO(synk): on v7x, consider fp8-e4m3 hE/W1e with a per-tensor scale.

    inv_scale = jnp.float32(1.0 / scale)
    w1 = params["W1"]                      # [H+Cin, H]
    w1v, w1e = w1[:H], w1[H:]
    bf = lambda a: a.astype(matmul_dtype)

    weights = [
        bf(w1v), bf(w1e), params["b1"],
        bf(params["W2"]), params["b2"],
        bf(params["W3"] * inv_scale), params["b3"] * inv_scale,
        params["g1"], params["be1"],
        bf(params["Win"]), params["bin"],
        bf(params["Wout"]), params["bout"],
        params["g2"], params["be2"],
    ]

    def full_spec(a):
        nd = a.ndim
        return pl.BlockSpec(a.shape, lambda i, k, _nd=nd: (0,) * _nd)

    in_specs = [
        pl.BlockSpec((tm, H), lambda i, k: (i, 0)),
        pl.BlockSpec((tm, tk, Cin), lambda i, k: (i, k, 0)),
        pl.BlockSpec((tm, tk, 1), lambda i, k: (i, k, 0)),
        pl.BlockSpec((tm, 1), lambda i, k: (i, 0)),
    ] + [full_spec(w) for w in weights]

    # Advisory cost estimate (W1 node part counted once per row, not per K).
    flops = int(2 * Rp * H * H                 # W1 node part
                + 2 * Rp * K * Cin * H         # W1 edge part
                + 2 * Rp * K * H * H           # W2
                + 2 * Rp * H * H               # W3 (after K-sum)
                + 2 * Rp * H * 4 * H * 2)      # FFN in + out
    transc = int(Rp * (2 * K * H + 4 * H) + 2 * Rp)   # tanh-gelu elems + rsqrt
    bytes_acc = int(hV2.size * 4 + hE3.size * hE3.dtype.itemsize
                    + ma3.size * 4 + mv2.size * 4
                    + Rp * H * jnp.dtype(h_V.dtype).itemsize
                    + sum(int(w.size) * w.dtype.itemsize for w in weights))

    out = pl.pallas_call(
        functools.partial(dec_layer_kernel, ew_dtype=ew_dtype),
        out_shape=jax.ShapeDtypeStruct((Rp, H), h_V.dtype),
        grid=(Rp // tm, K // tk),
        in_specs=in_specs,
        out_specs=pl.BlockSpec((tm, H), lambda i, k: (i, 0)),
        scratch_shapes=[
            pltpu.VMEM((tm, H), jnp.float32),   # node part of W1 (+ b1)
            pltpu.VMEM((tm, H), jnp.float32),   # masked K-sum accumulator
            pltpu.VMEM((tm, 1), jnp.float32),   # mask-count accumulator
        ],
        compiler_params=pltpu.CompilerParams(
            dimension_semantics=("parallel", "arbitrary"),
            vmem_limit_bytes=vmem_limit),
        cost_estimate=pl.CostEstimate(
            flops=flops, transcendentals=transc, bytes_accessed=bytes_acc),
    )(hV2, hE3, ma3, mv2, *weights)

    return out[:R].reshape(B, N, H)


def ref_dec_layer(h_V, h_E, mask_V, mask_attend, p, *, scale=30.0):
    """Pure-JAX f32 reference mirroring the PyTorch forward (dropout = identity)."""
    B, N, H = h_V.shape
    K = h_E.shape[2]
    hVe = jnp.broadcast_to(h_V[:, :, None, :], (B, N, K, H))
    h_EV = jnp.concatenate([hVe, h_E], axis=-1)
    h = _gelu_exact(h_EV @ p["W1"] + p["b1"])
    h = _gelu_exact(h @ p["W2"] + p["b2"])
    h_message = h @ p["W3"] + p["b3"]
    h_message = mask_attend[..., None] * h_message
    dh = jnp.sum(h_message, axis=-2) / scale
    x = _layer_norm(h_V + dh, p["g1"][0], p["be1"][0])
    ff = _gelu_exact(x @ p["Win"] + p["bin"]) @ p["Wout"] + p["bout"]
    y = _layer_norm(x + ff, p["g2"][0], p["be2"][0])
    return mask_V[..., None] * y


def init_params(key, num_hidden, num_in):
    H, Cin = num_hidden, num_in
    ks = jax.random.split(key, 10)
    s = 0.05
    p = {
        "W1": jax.random.normal(ks[0], (H + Cin, H), jnp.float32) * s,
        "b1": jax.random.normal(ks[1], (1, H), jnp.float32) * s,
        "W2": jax.random.normal(ks[2], (H, H), jnp.float32) * s,
        "b2": jax.random.normal(ks[3], (1, H), jnp.float32) * s,
        "W3": jax.random.normal(ks[4], (H, H), jnp.float32) * s,
        "b3": jax.random.normal(ks[5], (1, H), jnp.float32) * s,
        "g1": jnp.ones((1, H), jnp.float32),
        "be1": jnp.zeros((1, H), jnp.float32),
        "Win": jax.random.normal(ks[6], (H, 4 * H), jnp.float32) * s,
        "bin": jax.random.normal(ks[7], (1, 4 * H), jnp.float32) * s,
        "Wout": jax.random.normal(ks[8], (4 * H, H), jnp.float32) * s,
        "bout": jax.random.normal(ks[9], (1, H), jnp.float32) * s,
        "g2": jnp.ones((1, H), jnp.float32),
        "be2": jnp.zeros((1, H), jnp.float32),
    }
    return p


if __name__ == "__main__":
    B, N, K = 2, 16, 8
    num_hidden, num_in = 32, 48
    scale = 30.0

    key = jax.random.PRNGKey(0)
    kp, k1, k2, k3, k4 = jax.random.split(key, 5)

    params = init_params(kp, num_hidden, num_in)
    h_V = jax.random.normal(k1, (B, N, num_hidden), jnp.float32)
    h_E = jax.random.normal(k2, (B, N, K, num_in), jnp.float32)
    mask_attend = (jax.random.uniform(k3, (B, N, K)) > 0.3).astype(jnp.float32)
    mask_V = (jax.random.uniform(k4, (B, N)) > 0.2).astype(jnp.float32)

    out = dec_layer(h_V, h_E, mask_V, mask_attend, params, scale=scale, tm=256)
    out = jax.block_until_ready(out)

    ref = ref_dec_layer(h_V, h_E, mask_V, mask_attend, params, scale=scale)
    assert out.shape == (B, N, num_hidden)
    # bf16 matmul operands / bf16 elementwise / tanh GELU vs exact-erf f32 ref.
    max_err = float(jnp.max(jnp.abs(out - ref)))
    assert jnp.allclose(out, ref, rtol=3e-2, atol=3e-2), max_err

    print("KERNEL_OK")
</pallas_src>

<mosaic_0001>
module attributes {stable_mosaic.version = 11 : i64} {
  func.func @dec_layer_kernel(%arg0: i32, %arg1: i32, %arg2: memref<8x32xf32, #tpu.memory_space<vmem>>, %arg3: memref<8x8x48xbf16, #tpu.memory_space<vmem>>, %arg4: memref<8x8x1xf32, #tpu.memory_space<vmem>>, %arg5: memref<8x1xf32, #tpu.memory_space<vmem>>, %arg6: memref<32x32xbf16, #tpu.memory_space<vmem>>, %arg7: memref<48x32xbf16, #tpu.memory_space<vmem>>, %arg8: memref<1x32xf32, #tpu.memory_space<vmem>>, %arg9: memref<32x32xbf16, #tpu.memory_space<vmem>>, %arg10: memref<1x32xf32, #tpu.memory_space<vmem>>, %arg11: memref<32x32xbf16, #tpu.memory_space<vmem>>, %arg12: memref<1x32xf32, #tpu.memory_space<vmem>>, %arg13: memref<1x32xf32, #tpu.memory_space<vmem>>, %arg14: memref<1x32xf32, #tpu.memory_space<vmem>>, %arg15: memref<32x128xbf16, #tpu.memory_space<vmem>>, %arg16: memref<1x128xf32, #tpu.memory_space<vmem>>, %arg17: memref<128x32xbf16, #tpu.memory_space<vmem>>, %arg18: memref<1x32xf32, #tpu.memory_space<vmem>>, %arg19: memref<1x32xf32, #tpu.memory_space<vmem>>, %arg20: memref<1x32xf32, #tpu.memory_space<vmem>>, %arg21: memref<8x32xf32, #tpu.memory_space<vmem>>, %arg22: memref<8x32xf32, #tpu.memory_space<vmem>>, %arg23: memref<8x32xf32, #tpu.memory_space<vmem>>, %arg24: memref<8x1xf32, #tpu.memory_space<vmem>>) attributes {dimension_semantics = [#tpu.dimension_semantics<parallel>, #tpu.dimension_semantics<arbitrary>], iteration_bounds = array<i64: 4, 1>, scalar_prefetch = 0 : i64, scratch_operands = 3 : i64, tpu.core_type = #tpu.core_type<tc>, window_params = [{transform_indices = @transform_0, window_bounds = array<i64: 8, 32>}, {transform_indices = @transform_1, window_bounds = array<i64: 8, 8, 48>}, {transform_indices = @transform_2, window_bounds = array<i64: 8, 8, 1>}, {transform_indices = @transform_3, window_bounds = array<i64: 8, 1>}, {pipeline_mode = #tpu.pipeline_mode<synchronous>, transform_indices = @transform_4, window_bounds = array<i64: 32, 32>}, {pipeline_mode = #tpu.pipeline_mode<synchronous>, transform_indices = @transform_5, window_bounds = array<i64: 48, 32>}, {pipeline_mode = #tpu.pipeline_mode<synchronous>, transform_indices = @transform_6, window_bounds = array<i64: 1, 32>}, {pipeline_mode = #tpu.pipeline_mode<synchronous>, transform_indices = @transform_7, window_bounds = array<i64: 32, 32>}, {pipeline_mode = #tpu.pipeline_mode<synchronous>, transform_indices = @transform_8, window_bounds = array<i64: 1, 32>}, {pipeline_mode = #tpu.pipeline_mode<synchronous>, transform_indices = @transform_9, window_bounds = array<i64: 32, 32>}, {pipeline_mode = #tpu.pipeline_mode<synchronous>, transform_indices = @transform_10, window_bounds = array<i64: 1, 32>}, {pipeline_mode = #tpu.pipeline_mode<synchronous>, transform_indices = @transform_11, window_bounds = array<i64: 1, 32>}, {pipeline_mode = #tpu.pipeline_mode<synchronous>, transform_indices = @transform_12, window_bounds = array<i64: 1, 32>}, {pipeline_mode = #tpu.pipeline_mode<synchronous>, transform_indices = @transform_13, window_bounds = array<i64: 32, 128>}, {pipeline_mode = #tpu.pipeline_mode<synchronous>, transform_indices = @transform_14, window_bounds = array<i64: 1, 128>}, {pipeline_mode = #tpu.pipeline_mode<synchronous>, transform_indices = @transform_15, window_bounds = array<i64: 128, 32>}, {pipeline_mode = #tpu.pipeline_mode<synchronous>, transform_indices = @transform_16, window_bounds = array<i64: 1, 32>}, {pipeline_mode = #tpu.pipeline_mode<synchronous>, transform_indices = @transform_17, window_bounds = array<i64: 1, 32>}, {pipeline_mode = #tpu.pipeline_mode<synchronous>, transform_indices = @transform_18, window_bounds = array<i64: 1, 32>}, {transform_indices = @transform_19, window_bounds = array<i64: 8, 32>}]} {
    %c0_i32 = arith.constant 0 : i32
    %0 = arith.cmpi eq, %arg1, %c0_i32 : i32
    %1 = arith.extui %0 : i1 to i32
    %c0_i32_0 = arith.constant 0 : i32
    %2 = arith.cmpi ne, %1, %c0_i32_0 : i32
    scf.if %2 {
      %c0_35 = arith.constant 0 : index
      %c0_36 = arith.constant 0 : index
      %67 = vector.load %arg2[%c0_35, %c0_36] : memref<8x32xf32, #tpu.memory_space<vmem>>, vector<8x32xf32>
      %68 = arith.truncf %67 : vector<8x32xf32> to vector<8x32xbf16>
      %c0_37 = arith.constant 0 : index
      %c0_38 = arith.constant 0 : index
      %69 = vector.load %arg6[%c0_37, %c0_38] : memref<32x32xbf16, #tpu.memory_space<vmem>>, vector<32x32xbf16>
      %cst_39 = arith.constant dense<0.000000e+00> : vector<8x32xf32>
      %70 = tpu.matmul %68, %69, %cst_39 {dimension_numbers = #tpu.dot_dimension_numbers<[1], [0], [0], [1], [0, 0, 1, 1], [], []>} : vector<8x32xbf16>, vector<32x32xbf16>, vector<8x32xf32> -> vector<8x32xf32>
      %c0_40 = arith.constant 0 : index
      %c0_41 = arith.constant 0 : index
      %71 = vector.load %arg8[%c0_40, %c0_41] : memref<1x32xf32, #tpu.memory_space<vmem>>, vector<1x32xf32>
      %72 = vector.shape_cast %71 : vector<1x32xf32> to vector<32xf32>
      %73 = vector.shape_cast %72 : vector<32xf32> to vector<1x32xf32>
      %74 = vector.broadcast %73 : vector<1x32xf32> to vector<8x32xf32>
      %75 = arith.addf %70, %74 : vector<8x32xf32>
      %c0_42 = arith.constant 0 : index
      %c0_43 = arith.constant 0 : index
      %76 = vector.load %arg22[%c0_42, %c0_43] : memref<8x32xf32, #tpu.memory_space<vmem>>, vector<8x32xf32>
      tpu.vector_store %arg22[%c0_42, %c0_43], %75 {strides = array<i32>} : memref<8x32xf32, #tpu.memory_space<vmem>>, vector<8x32xf32>,
      %cst_44 = arith.constant 0.000000e+00 : f32
      %77 = vector.broadcast %cst_44 : f32 to vector<8x32xf32>
      %c0_45 = arith.constant 0 : index
      %c0_46 = arith.constant 0 : index
      %78 = vector.load %arg23[%c0_45, %c0_46] : memref<8x32xf32, #tpu.memory_space<vmem>>, vector<8x32xf32>
      tpu.vector_store %arg23[%c0_45, %c0_46], %77 {strides = array<i32>} : memref<8x32xf32, #tpu.memory_space<vmem>>, vector<8x32xf32>,
      %cst_47 = arith.constant 0.000000e+00 : f32
      %79 = vector.broadcast %cst_47 : f32 to vector<8x1xf32>
      %c0_48 = arith.constant 0 : index
      %c0_49 = arith.constant 0 : index
      %80 = vector.load %arg24[%c0_48, %c0_49] : memref<8x1xf32, #tpu.memory_space<vmem>>, vector<8x1xf32>
      tpu.vector_store %arg24[%c0_48, %c0_49], %79 {strides = array<i32>} : memref<8x1xf32, #tpu.memory_space<vmem>>, vector<8x1xf32>,
    } else {
    }
    %c0 = arith.constant 0 : index
    %c0_1 = arith.constant 0 : index
    %c0_2 = arith.constant 0 : index
    %3 = vector.load %arg3[%c0, %c0_1, %c0_2] : memref<8x8x48xbf16, #tpu.memory_space<vmem>>, vector<8x8x48xbf16>
    %4 = vector.shape_cast %3 : vector<8x8x48xbf16> to vector<64x48xbf16>
    %c0_3 = arith.constant 0 : index
    %c0_4 = arith.constant 0 : index
    %5 = vector.load %arg7[%c0_3, %c0_4] : memref<48x32xbf16, #tpu.memory_space<vmem>>, vector<48x32xbf16>
    %cst = arith.constant dense<0.000000e+00> : vector<64x32xf32>
    %6 = tpu.matmul %4, %5, %cst {dimension_numbers = #tpu.dot_dimension_numbers<[1], [0], [0], [1], [0, 0, 1, 1], [], []>} : vector<64x48xbf16>, vector<48x32xbf16>, vector<64x32xf32> -> vector<64x32xf32>
    %7 = vector.shape_cast %6 : vector<64x32xf32> to vector<8x8x32xf32>
    %c0_5 = arith.constant 0 : index
    %c0_6 = arith.constant 0 : index
    %8 = vector.load %arg22[%c0_5, %c0_6] : memref<8x32xf32, #tpu.memory_space<vmem>>, vector<8x32xf32>
    %9 = vector.shape_cast %8 : vector<8x32xf32> to vector<8x1x32xf32>
    %10 = vector.broadcast %9 : vector<8x1x32xf32> to vector<8x8x32xf32>
    %11 = arith.addf %7, %10 : vector<8x8x32xf32>
    %12 = arith.truncf %11 : vector<8x8x32xf32> to vector<8x8x32xbf16>
    %13 = arith.mulf %12, %12 : vector<8x8x32xbf16>
    %14 = arith.mulf %12, %13 : vector<8x8x32xbf16>
    %cst_7 = arith.constant 4.467770e-02 : bf16
    %15 = vector.broadcast %cst_7 : bf16 to vector<8x8x32xbf16>
    %16 = arith.mulf %15, %14 : vector<8x8x32xbf16>
    %17 = arith.addf %12, %16 : vector<8x8x32xbf16>
    %cst_8 = arith.constant 7.968750e-01 : bf16
    %18 = vector.broadcast %cst_8 : bf16 to vector<8x8x32xbf16>
    %19 = arith.mulf %18, %17 : vector<8x8x32xbf16>
    %20 = math.tanh %19 : vector<8x8x32xbf16>
    %cst_9 = arith.constant 1.000000e+00 : bf16
    %21 = vector.broadcast %cst_9 : bf16 to vector<8x8x32xbf16>
    %22 = arith.addf %21, %20 : vector<8x8x32xbf16>
    %cst_10 = arith.constant 5.000000e-01 : bf16
    %23 = vector.broadcast %cst_10 : bf16 to vector<8x8x32xbf16>
    %24 = arith.mulf %23, %22 : vector<8x8x32xbf16>
    %25 = arith.mulf %12, %24 : vector<8x8x32xbf16>
    %26 = vector.shape_cast %25 : vector<8x8x32xbf16> to vector<64x32xbf16>
    %c0_11 = arith.constant 0 : index
    %c0_12 = arith.constant 0 : index
    %27 = vector.load %arg9[%c0_11, %c0_12] : memref<32x32xbf16, #tpu.memory_space<vmem>>, vector<32x32xbf16>
    %cst_13 = arith.constant dense<0.000000e+00> : vector<64x32xf32>
    %28 = tpu.matmul %26, %27, %cst_13 {dimension_numbers = #tpu.dot_dimension_numbers<[1], [0], [0], [1], [0, 0, 1, 1], [], []>} : vector<64x32xbf16>, vector<32x32xbf16>, vector<64x32xf32> -> vector<64x32xf32>
    %c0_14 = arith.constant 0 : index
    %c0_15 = arith.constant 0 : index
    %29 = vector.load %arg10[%c0_14, %c0_15] : memref<1x32xf32, #tpu.memory_space<vmem>>, vector<1x32xf32>
    %30 = vector.shape_cast %29 : vector<1x32xf32> to vector<32xf32>
    %31 = vector.shape_cast %30 : vector<32xf32> to vector<1x32xf32>
    %32 = vector.broadcast %31 : vector<1x32xf32> to vector<64x32xf32>
    %33 = arith.addf %28, %32 : vector<64x32xf32>
    %34 = arith.truncf %33 : vector<64x32xf32> to vector<64x32xbf16>
    %35 = arith.mulf %34, %34 : vector<64x32xbf16>
    %36 = arith.mulf %34, %35 : vector<64x32xbf16>
    %cst_16 = arith.constant 4.467770e-02 : bf16
    %37 = vector.broadcast %cst_16 : bf16 to vector<64x32xbf16>
    %38 = arith.mulf %37, %36 : vector<64x32xbf16>
    %39 = arith.addf %34, %38 : vector<64x32xbf16>
    %cst_17 = arith.constant 7.968750e-01 : bf16
    %40 = vector.broadcast %cst_17 : bf16 to vector<64x32xbf16>
    %41 = arith.mulf %40, %39 : vector<64x32xbf16>
    %42 = math.tanh %41 : vector<64x32xbf16>
    %cst_18 = arith.constant 1.000000e+00 : bf16
    %43 = vector.broadcast %cst_18 : bf16 to vector<64x32xbf16>
    %44 = arith.addf %43, %42 : vector<64x32xbf16>
    %cst_19 = arith.constant 5.000000e-01 : bf16
    %45 = vector.broadcast %cst_19 : bf16 to vector<64x32xbf16>
    %46 = arith.mulf %45, %44 : vector<64x32xbf16>
    %47 = arith.mulf %34, %46 : vector<64x32xbf16>
    %48 = vector.shape_cast %47 : vector<64x32xbf16> to vector<8x8x32xbf16>
    %c0_20 = arith.constant 0 : index
    %c0_21 = arith.constant 0 : index
    %c0_22 = arith.constant 0 : index
    %49 = vector.load %arg4[%c0_20, %c0_21, %c0_22] : memref<8x8x1xf32, #tpu.memory_space<vmem>>, vector<8x8x1xf32>
    %50 = arith.truncf %49 : vector<8x8x1xf32> to vector<8x8x1xbf16>
    %51 = vector.broadcast %50 : vector<8x8x1xbf16> to vector<8x8x32xbf16>
    %52 = arith.mulf %48, %51 : vector<8x8x32xbf16>
    %c0_23 = arith.constant 0 : index
    %c0_24 = arith.constant 0 : index
    %53 = vector.load %arg23[%c0_23, %c0_24] : memref<8x32xf32, #tpu.memory_space<vmem>>, vector<8x32xf32>
    %54 = arith.extf %52 : vector<8x8x32xbf16> to vector<8x8x32xf32>
    %cst_25 = arith.constant dense<0.000000e+00> : vector<8x32xf32>
    %55 = vector.multi_reduction <add>, %54, %cst_25 [1] : vector<8x8x32xf32> to vector<8x32xf32>
    %56 = arith.addf %53, %55 : vector<8x32xf32>
    %c0_26 = arith.constant 0 : index
    %c0_27 = arith.constant 0 : index
    %57 = vector.load %arg23[%c0_26, %c0_27] : memref<8x32xf32, #tpu.memory_space<vmem>>, vector<8x32xf32>
    tpu.vector_store %arg23[%c0_26, %c0_27], %56 {strides = array<i32>} : memref<8x32xf32, #tpu.memory_space<vmem>>, vector<8x32xf32>,
    %c0_28 = arith.constant 0 : index
    %c0_29 = arith.constant 0 : index
    %58 = vector.load %arg24[%c0_28, %c0_29] : memref<8x1xf32, #tpu.memory_space<vmem>>, vector<8x1xf32>
    %59 = vector.shape_cast %49 : vector<8x8x1xf32> to vector<8x8xf32>
    %cst_30 = arith.constant dense<0.000000e+00> : vector<8xf32>
    %60 = vector.multi_reduction <add>, %59, %cst_30 [1] : vector<8x8xf32> to vector<8xf32>
    %61 = vector.shape_cast %60 : vector<8xf32> to vector<8x1xf32>
    %62 = arith.addf %58, %61 : vector<8x1xf32>
    %c0_31 = arith.constant 0 : index
    %c0_32 = arith.constant 0 : index
    %63 = vector.load %arg24[%c0_31, %c0_32] : memref<8x1xf32, #tpu.memory_space<vmem>>, vector<8x1xf32>
    tpu.vector_store %arg24[%c0_31, %c0_32], %62 {strides = array<i32>} : memref<8x1xf32, #tpu.memory_space<vmem>>, vector<8x1xf32>,
    %c0_i32_33 = arith.constant 0 : i32
    %64 = arith.cmpi eq, %arg1, %c0_i32_33 : i32
    %65 = arith.extui %64 : i1 to i32
    %c0_i32_34 = arith.constant 0 : i32
    %66 = arith.cmpi ne, %65, %c0_i32_34 : i32
    scf.if %66 {
      %c0_35 = arith.constant 0 : index
      %c0_36 = arith.constant 0 : index
      %67 = vector.load %arg2[%c0_35, %c0_36] : memref<8x32xf32, #tpu.memory_space<vmem>>, vector<8x32xf32>
      %c0_37 = arith.constant 0 : index
      %c0_38 = arith.constant 0 : index
      %68 = vector.load %arg23[%c0_37, %c0_38] : memref<8x32xf32, #tpu.memory_space<vmem>>, vector<8x32xf32>
      %69 = arith.truncf %68 : vector<8x32xf32> to vector<8x32xbf16>
      %c0_39 = arith.constant 0 : index
      %c0_40 = arith.constant 0 : index
      %70 = vector.load %arg11[%c0_39, %c0_40] : memref<32x32xbf16, #tpu.memory_space<vmem>>, vector<32x32xbf16>
      %cst_41 = arith.constant dense<0.000000e+00> : vector<8x32xf32>
      %71 = tpu.matmul %69, %70, %cst_41 {dimension_numbers = #tpu.dot_dimension_numbers<[1], [0], [0], [1], [0, 0, 1, 1], [], []>} : vector<8x32xbf16>, vector<32x32xbf16>, vector<8x32xf32> -> vector<8x32xf32>
      %c0_42 = arith.constant 0 : index
      %c0_43 = arith.constant 0 : index
      %72 = vector.load %arg24[%c0_42, %c0_43] : memref<8x1xf32, #tpu.memory_space<vmem>>, vector<8x1xf32>
      %c0_44 = arith.constant 0 : index
      %c0_45 = arith.constant 0 : index
      %73 = vector.load %arg12[%c0_44, %c0_45] : memref<1x32xf32, #tpu.memory_space<vmem>>, vector<1x32xf32>
      %74 = vector.shape_cast %73 : vector<1x32xf32> to vector<32xf32>
      %75 = vector.shape_cast %74 : vector<32xf32> to vector<1x32xf32>
      %76 = vector.broadcast %72 : vector<8x1xf32> to vector<8x32xf32>
      %77 = vector.broadcast %75 : vector<1x32xf32> to vector<8x32xf32>
      %78 = arith.mulf %76, %77 : vector<8x32xf32>
      %79 = arith.addf %71, %78 : vector<8x32xf32>
      %80 = arith.addf %67, %79 : vector<8x32xf32>
      %c0_46 = arith.constant 0 : index
      %c0_47 = arith.constant 0 : index
      %81 = vector.load %arg13[%c0_46, %c0_47] : memref<1x32xf32, #tpu.memory_space<vmem>>, vector<1x32xf32>
      %82 = vector.shape_cast %81 : vector<1x32xf32> to vector<32xf32>
      %c0_48 = arith.constant 0 : index
      %c0_49 = arith.constant 0 : index
      %83 = vector.load %arg14[%c0_48, %c0_49] : memref<1x32xf32, #tpu.memory_space<vmem>>, vector<1x32xf32>
      %84 = vector.shape_cast %83 : vector<1x32xf32> to vector<32xf32>
      %cst_50 = arith.constant dense<0.000000e+00> : vector<8xf32>
      %85 = vector.multi_reduction <add>, %80, %cst_50 [1] : vector<8x32xf32> to vector<8xf32>
      %86 = vector.shape_cast %85 : vector<8xf32> to vector<8x1xf32>
      %cst_51 = arith.constant 3.200000e+01 : f32
      %87 = vector.broadcast %cst_51 : f32 to vector<8x1xf32>
      %88 = arith.divf %86, %87 : vector<8x1xf32>
      %89 = vector.broadcast %88 : vector<8x1xf32> to vector<8x32xf32>
      %90 = arith.subf %80, %89 : vector<8x32xf32>
      %91 = arith.mulf %90, %90 : vector<8x32xf32>
      %cst_52 = arith.constant dense<0.000000e+00> : vector<8xf32>
      %92 = vector.multi_reduction <add>, %91, %cst_52 [1] : vector<8x32xf32> to vector<8xf32>
      %93 = vector.shape_cast %92 : vector<8xf32> to vector<8x1xf32>
      %cst_53 = arith.constant 3.200000e+01 : f32
      %94 = vector.broadcast %cst_53 : f32 to vector<8x1xf32>
      %95 = arith.divf %93, %94 : vector<8x1xf32>
      %96 = vector.broadcast %88 : vector<8x1xf32> to vector<8x32xf32>
      %97 = arith.subf %80, %96 : vector<8x32xf32>
      %cst_54 = arith.constant 9.99999974E-6 : f32
      %98 = vector.broadcast %cst_54 : f32 to vector<8x1xf32>
      %99 = arith.addf %95, %98 : vector<8x1xf32>
      %100 = math.rsqrt %99 : vector<8x1xf32>
      %101 = vector.broadcast %100 : vector<8x1xf32> to vector<8x32xf32>
      %102 = arith.mulf %97, %101 : vector<8x32xf32>
      %103 = vector.shape_cast %82 : vector<32xf32> to vector<1x32xf32>
      %104 = vector.broadcast %103 : vector<1x32xf32> to vector<8x32xf32>
      %105 = arith.mulf %102, %104 : vector<8x32xf32>
      %106 = vector.shape_cast %84 : vector<32xf32> to vector<1x32xf32>
      %107 = vector.broadcast %106 : vector<1x32xf32> to vector<8x32xf32>
      %108 = arith.addf %105, %107 : vector<8x32xf32>
      %109 = arith.truncf %108 : vector<8x32xf32> to vector<8x32xbf16>
      %c0_55 = arith.constant 0 : index
      %c0_56 = arith.constant 0 : index
      %110 = vector.load %arg15[%c0_55, %c0_56] : memref<32x128xbf16, #tpu.memory_space<vmem>>, vector<32x128xbf16>
      %cst_57 = arith.constant dense<0.000000e+00> : vector<8x128xf32>
      %111 = tpu.matmul %109, %110, %cst_57 {dimension_numbers = #tpu.dot_dimension_numbers<[1], [0], [0], [1], [0, 0, 1, 1], [], []>} : vector<8x32xbf16>, vector<32x128xbf16>, vector<8x128xf32> -> vector<8x128xf32>
      %c0_58 = arith.constant 0 : index
      %c0_59 = arith.constant 0 : index
      %112 = vector.load %arg16[%c0_58, %c0_59] : memref<1x128xf32, #tpu.memory_space<vmem>>, vector<1x128xf32>
      %113 = vector.shape_cast %112 : vector<1x128xf32> to vector<128xf32>
      %114 = vector.shape_cast %113 : vector<128xf32> to vector<1x128xf32>
      %115 = vector.broadcast %114 : vector<1x128xf32> to vector<8x128xf32>
      %116 = arith.addf %111, %115 : vector<8x128xf32>
      %117 = arith.truncf %116 : vector<8x128xf32> to vector<8x128xbf16>
      %118 = arith.mulf %117, %117 : vector<8x128xbf16>
      %119 = arith.mulf %117, %118 : vector<8x128xbf16>
      %cst_60 = arith.constant 4.467770e-02 : bf16
      %120 = vector.broadcast %cst_60 : bf16 to vector<8x128xbf16>
      %121 = arith.mulf %120, %119 : vector<8x128xbf16>
      %122 = arith.addf %117, %121 : vector<8x128xbf16>
      %cst_61 = arith.constant 7.968750e-01 : bf16
      %123 = vector.broadcast %cst_61 : bf16 to vector<8x128xbf16>
      %124 = arith.mulf %123, %122 : vector<8x128xbf16>
      %125 = math.tanh %124 : vector<8x128xbf16>
      %cst_62 = arith.constant 1.000000e+00 : bf16
      %126 = vector.broadcast %cst_62 : bf16 to vector<8x128xbf16>
      %127 = arith.addf %126, %125 : vector<8x128xbf16>
      %cst_63 = arith.constant 5.000000e-01 : bf16
      %128 = vector.broadcast %cst_63 : bf16 to vector<8x128xbf16>
      %129 = arith.mulf %128, %127 : vector<8x128xbf16>
      %130 = arith.mulf %117, %129 : vector<8x128xbf16>
      %c0_64 = arith.constant 0 : index
      %c0_65 = arith.constant 0 : index
      %131 = vector.load %arg17[%c0_64, %c0_65] : memref<128x32xbf16, #tpu.memory_space<vmem>>, vector<128x32xbf16>
      %cst_66 = arith.constant dense<0.000000e+00> : vector<8x32xf32>
      %132 = tpu.matmul %130, %131, %cst_66 {dimension_numbers = #tpu.dot_dimension_numbers<[1], [0], [0], [1], [0, 0, 1, 1], [], []>} : vector<8x128xbf16>, vector<128x32xbf16>, vector<8x32xf32> -> vector<8x32xf32>
      %c0_67 = arith.constant 0 : index
      %c0_68 = arith.constant 0 : index
      %133 = vector.load %arg18[%c0_67, %c0_68] : memref<1x32xf32, #tpu.memory_space<vmem>>, vector<1x32xf32>
      %134 = vector.shape_cast %133 : vector<1x32xf32> to vector<32xf32>
      %135 = vector.shape_cast %134 : vector<32xf32> to vector<1x32xf32>
      %136 = vector.broadcast %135 : vector<1x32xf32> to vector<8x32xf32>
      %137 = arith.addf %132, %136 : vector<8x32xf32>
      %138 = arith.addf %108, %137 : vector<8x32xf32>
      %c0_69 = arith.constant 0 : index
      %c0_70 = arith.constant 0 : index
      %139 = vector.load %arg19[%c0_69, %c0_70] : memref<1x32xf32, #tpu.memory_space<vmem>>, vector<1x32xf32>
      %140 = vector.shape_cast %139 : vector<1x32xf32> to vector<32xf32>
      %c0_71 = arith.constant 0 : index
      %c0_72 = arith.constant 0 : index
      %141 = vector.load %arg20[%c0_71, %c0_72] : memref<1x32xf32, #tpu.memory_space<vmem>>, vector<1x32xf32>
      %142 = vector.shape_cast %141 : vector<1x32xf32> to vector<32xf32>
      %cst_73 = arith.constant dense<0.000000e+00> : vector<8xf32>
      %143 = vector.multi_reduction <add>, %138, %cst_73 [1] : vector<8x32xf32> to vector<8xf32>
      %144 = vector.shape_cast %143 : vector<8xf32> to vector<8x1xf32>
      %cst_74 = arith.constant 3.200000e+01 : f32
      %145 = vector.broadcast %cst_74 : f32 to vector<8x1xf32>
      %146 = arith.divf %144, %145 : vector<8x1xf32>
      %147 = vector.broadcast %146 : vector<8x1xf32> to vector<8x32xf32>
      %148 = arith.subf %138, %147 : vector<8x32xf32>
      %149 = arith.mulf %148, %148 : vector<8x32xf32>
      %cst_75 = arith.constant dense<0.000000e+00> : vector<8xf32>
      %150 = vector.multi_reduction <add>, %149, %cst_75 [1] : vector<8x32xf32> to vector<8xf32>
      %151 = vector.shape_cast %150 : vector<8xf32> to vector<8x1xf32>
      %cst_76 = arith.constant 3.200000e+01 : f32
      %152 = vector.broadcast %cst_76 : f32 to vector<8x1xf32>
      %153 = arith.divf %151, %152 : vector<8x1xf32>
      %154 = vector.broadcast %146 : vector<8x1xf32> to vector<8x32xf32>
      %155 = arith.subf %138, %154 : vector<8x32xf32>
      %cst_77 = arith.constant 9.99999974E-6 : f32
      %156 = vector.broadcast %cst_77 : f32 to vector<8x1xf32>
      %157 = arith.addf %153, %156 : vector<8x1xf32>
      %158 = math.rsqrt %157 : vector<8x1xf32>
      %159 = vector.broadcast %158 : vector<8x1xf32> to vector<8x32xf32>
      %160 = arith.mulf %155, %159 : vector<8x32xf32>
      %161 = vector.shape_cast %140 : vector<32xf32> to vector<1x32xf32>
      %162 = vector.broadcast %161 : vector<1x32xf32> to vector<8x32xf32>
      %163 = arith.mulf %160, %162 : vector<8x32xf32>
      %164 = vector.shape_cast %142 : vector<32xf32> to vector<1x32xf32>
      %165 = vector.broadcast %164 : vector<1x32xf32> to vector<8x32xf32>
      %166 = arith.addf %163, %165 : vector<8x32xf32>
      %c0_78 = arith.constant 0 : index
      %c0_79 = arith.constant 0 : index
      %167 = vector.load %arg5[%c0_78, %c0_79] : memref<8x1xf32, #tpu.memory_space<vmem>>, vector<8x1xf32>
      %168 = vector.broadcast %167 : vector<8x1xf32> to vector<8x32xf32>
      %169 = arith.mulf %166, %168 : vector<8x32xf32>
      %c0_80 = arith.constant 0 : index
      %c0_81 = arith.constant 0 : index
      %170 = vector.load %arg21[%c0_80, %c0_81] : memref<8x32xf32, #tpu.memory_space<vmem>>, vector<8x32xf32>
      tpu.vector_store %arg21[%c0_80, %c0_81], %169 {strides = array<i32>} : memref<8x32xf32, #tpu.memory_space<vmem>>, vector<8x32xf32>,
    } else {
    }
    return
  }
  func.func @transform_0(%arg0: i32, %arg1: i32) -> (i32, i32) {
    %c0_i32 = arith.constant 0 : i32
    %c0_i32_0 = arith.constant 0 : i32
    return %arg0, %c0_i32 : i32, i32
  }
  func.func @transform_1(%arg0: i32, %arg1: i32) -> (i32, i32, i32) {
    %c0_i32 = arith.constant 0 : i32
    %c0_i32_0 = arith.constant 0 : i32
    return %arg0, %arg1, %c0_i32 : i32, i32, i32
  }
  func.func @transform_2(%arg0: i32, %arg1: i32) -> (i32, i32, i32) {
    %c0_i32 = arith.constant 0 : i32
    %c0_i32_0 = arith.constant 0 : i32
    return %arg0, %arg1, %c0_i32 : i32, i32, i32
  }
  func.func @transform_3(%arg0: i32, %arg1: i32) -> (i32, i32) {
    %c0_i32 = arith.constant 0 : i32
    %c0_i32_0 = arith.constant 0 : i32
    return %arg0, %c0_i32 : i32, i32
  }
  func.func @transform_4(%arg0: i32, %arg1: i32) -> (i32, i32) {
    %c0_i32 = arith.constant 0 : i32
    %c0_i32_0 = arith.constant 0 : i32
    %c0_i32_1 = arith.constant 0 : i32
    return %c0_i32, %c0_i32_0 : i32, i32
  }
  func.func @transform_5(%arg0: i32, %arg1: i32) -> (i32, i32) {
    %c0_i32 = arith.constant 0 : i32
    %c0_i32_0 = arith.constant 0 : i32
    %c0_i32_1 = arith.constant 0 : i32
    return %c0_i32, %c0_i32_0 : i32, i32
  }
  func.func @transform_6(%arg0: i32, %arg1: i32) -> (i32, i32) {
    %c0_i32 = arith.constant 0 : i32
    %c0_i32_0 = arith.constant 0 : i32
    %c0_i32_1 = arith.constant 0 : i32
    return %c0_i32, %c0_i32_0 : i32, i32
  }
  func.func @transform_7(%arg0: i32, %arg1: i32) -> (i32, i32) {
    %c0_i32 = arith.constant 0 : i32
    %c0_i32_0 = arith.constant 0 : i32
    %c0_i32_1 = arith.constant 0 : i32
    return %c0_i32, %c0_i32_0 : i32, i32
  }
  func.func @transform_8(%arg0: i32, %arg1: i32) -> (i32, i32) {
    %c0_i32 = arith.constant 0 : i32
    %c0_i32_0 = arith.constant 0 : i32
    %c0_i32_1 = arith.constant 0 : i32
    return %c0_i32, %c0_i32_0 : i32, i32
  }
  func.func @transform_9(%arg0: i32, %arg1: i32) -> (i32, i32) {
    %c0_i32 = arith.constant 0 : i32
    %c0_i32_0 = arith.constant 0 : i32
    %c0_i32_1 = arith.constant 0 : i32
    return %c0_i32, %c0_i32_0 : i32, i32
  }
  func.func @transform_10(%arg0: i32, %arg1: i32) -> (i32, i32) {
    %c0_i32 = arith.constant 0 : i32
    %c0_i32_0 = arith.constant 0 : i32
    %c0_i32_1 = arith.constant 0 : i32
    return %c0_i32, %c0_i32_0 : i32, i32
  }
  func.func @transform_11(%arg0: i32, %arg1: i32) -> (i32, i32) {
    %c0_i32 = arith.constant 0 : i32
    %c0_i32_0 = arith.constant 0 : i32
    %c0_i32_1 = arith.constant 0 : i32
    return %c0_i32, %c0_i32_0 : i32, i32
  }
  func.func @transform_12(%arg0: i32, %arg1: i32) -> (i32, i32) {
    %c0_i32 = arith.constant 0 : i32
    %c0_i32_0 = arith.constant 0 : i32
    %c0_i32_1 = arith.constant 0 : i32
    return %c0_i32, %c0_i32_0 : i32, i32
  }
  func.func @transform_13(%arg0: i32, %arg1: i32) -> (i32, i32) {
    %c0_i32 = arith.constant 0 : i32
    %c0_i32_0 = arith.constant 0 : i32
    %c0_i32_1 = arith.constant 0 : i32
    return %c0_i32, %c0_i32_0 : i32, i32
  }
  func.func @transform_14(%arg0: i32, %arg1: i32) -> (i32, i32) {
    %c0_i32 = arith.constant 0 : i32
    %c0_i32_0 = arith.constant 0 : i32
    %c0_i32_1 = arith.constant 0 : i32
    return %c0_i32, %c0_i32_0 : i32, i32
  }
  func.func @transform_15(%arg0: i32, %arg1: i32) -> (i32, i32) {
    %c0_i32 = arith.constant 0 : i32
    %c0_i32_0 = arith.constant 0 : i32
    %c0_i32_1 = arith.constant 0 : i32
    return %c0_i32, %c0_i32_0 : i32, i32
  }
  func.func @transform_16(%arg0: i32, %arg1: i32) -> (i32, i32) {
    %c0_i32 = arith.constant 0 : i32
    %c0_i32_0 = arith.constant 0 : i32
    %c0_i32_1 = arith.constant 0 : i32
    return %c0_i32, %c0_i32_0 : i32, i32
  }
  func.func @transform_17(%arg0: i32, %arg1: i32) -> (i32, i32) {
    %c0_i32 = arith.constant 0 : i32
    %c0_i32_0 = arith.constant 0 : i32
    %c0_i32_1 = arith.constant 0 : i32
    return %c0_i32, %c0_i32_0 : i32, i32
  }
  func.func @transform_18(%arg0: i32, %arg1: i32) -> (i32, i32) {
    %c0_i32 = arith.constant 0 : i32
    %c0_i32_0 = arith.constant 0 : i32
    %c0_i32_1 = arith.constant 0 : i32
    return %c0_i32, %c0_i32_0 : i32, i32
  }
  func.func @transform_19(%arg0: i32, %arg1: i32) -> (i32, i32) {
    %c0_i32 = arith.constant 0 : i32
    %c0_i32_0 = arith.constant 0 : i32
    return %arg0, %c0_i32 : i32, i32
  }
}

</mosaic_0001>

<bundles_post_ra>
// kernel: tpu_custom_call.1
= control target key start
LH: loop header
LB: loop body
LE: loop exit
PB: predicated region body
PF: predicated region fallthrough
CT: control target
= control target key end

     0   :  { %s2805_s0 = inlined_call_operand.vmem [shape: f32[32,32], index: 0, kind: input, shape index: {}]   ;;  %s2806_s1 = inlined_call_operand.vmem [shape: bf16[32,8,48], index: 1, kind: input, shape index: {}]   ;;  %s2807_s2 = inlined_call_operand.vmem [shape: f32[32,8,1], index: 2, kind: input, shape index: {}]   ;;  %s2808_s3 = inlined_call_operand.vmem [shape: f32[32,1], index: 3, kind: input, shape index: {}]   ;;  %s2809_s4 = inlined_call_operand.vmem [shape: bf16[32,32], index: 4, kind: input, shape index: {}]   ;;  %s2810_s5 = inlined_call_operand.vmem [shape: bf16[48,32], index: 5, kind: input, shape index: {}]   ;;  %s2811_s6 = inlined_call_operand.vmem [shape: f32[1,32], index: 6, kind: input, shape index: {}]   ;;  %s2812_s7 = inlined_call_operand.vmem [shape: bf16[32,32], index: 7, kind: input, shape index: {}]   ;;  %s2813_s8 = inlined_call_operand.vmem [shape: f32[1,32], index: 8, kind: input, shape index: {}]   ;;  %s2814_s9 = inlined_call_operand.vmem [shape: bf16[32,32], index: 9, kind: input, shape index: {}]   ;;  %s2815_s10 = inlined_call_operand.vmem [shape: f32[1,32], index: 10, kind: input, shape index: {}]   ;;  %s2816_s11 = inlined_call_operand.vmem [shape: f32[1,32], index: 11, kind: input, shape index: {}]   ;;  %s2817_s12 = inlined_call_operand.vmem [shape: f32[1,32], index: 12, kind: input, shape index: {}]   ;;  %s2818_s13 = inlined_call_operand.vmem [shape: bf16[32,128], index: 13, kind: input, shape index: {}]   ;;  %s2819_s14 = inlined_call_operand.vmem [shape: f32[1,128], index: 14, kind: input, shape index: {}]   ;;  %s2820_s15 = inlined_call_operand.vmem [shape: bf16[128,32], index: 15, kind: input, shape index: {}]   ;;  %s2821_s16 = inlined_call_operand.vmem [shape: f32[1,32], index: 16, kind: input, shape index: {}]   ;;  %s2822_s17 = inlined_call_operand.vmem [shape: f32[1,32], index: 17, kind: input, shape index: {}]   ;;  %s2823_s18 = inlined_call_operand.vmem [shape: f32[1,32], index: 18, kind: input, shape index: {}]   ;;  %s2824_s19 = inlined_call_operand.hbm [shape: f32[32,32], index: 19, kind: output, shape index: {}]  }
   0x1   :  { %2831 = sst [smem:[#allocation14_spill]] %s2805_s0 }
   0x2   :  { %2832 = sst [smem:[#allocation15_spill]] %s2806_s1 }
   0x3   :  { %2833 = sst [smem:[#allocation16_spill]] %s2807_s2 }
   0x4   :  { %2834 = sst [smem:[#allocation17_spill]] %s2808_s3 }
   0x5   :  { %2835 = sst [smem:[#allocation18_spill]] %s2809_s4 }
   0x6   :  { %2836 = sst [smem:[#allocation19_spill]] %s2810_s5 }
   0x7   :  { %24 = vsyncpa [#allocation6], 0 }
   0x8   :  { %26 = vsyncpa [#allocation6 + $0x1], 0  ;;  %s2440_s0 = smov 0   ;;  %s2442_s30 = smov 0  }
   0x9   :  { %s2444_s20 = smov 0   ;;  %s2446_s21 = smov 0  }
   0xa   :  { %s2448_s1 = smov 0   ;;  %s2450_s22 = smov 0  }
   0xb LB: > { %2837 = sst [smem:[#allocation8_spill]] %s2313_s0  ;;  %s1968_s2 = sadd.s32 4294967295, %s2333_s22   ;;  %s2333_s22 = sphi %s2450_s22, %s32_s22   ;;  %s2329_s1 = sphi %s2448_s1, %s2857_s1   ;;  %s2325_s21 = sphi %s2446_s21, %s2856_s21   ;;  %s2321_s20 = sphi %s2444_s20, %s2855_s20   ;;  %s2317_s30 = sphi %s2442_s30, %s2859_s30   ;;  %s2313_s0 = sphi %s2440_s0, %s2858_s0  }
   0xc   : > { %2838 = sst [smem:[#allocation9_spill]] %s2321_s20  ;;  %s1969_s23 = sadd.s32 4294967294, %s2333_s22  }
   0xd   : > { %2839 = sst [smem:[#allocation10_spill]] %s2329_s1  ;;  %s44_s24 = sadd.s32 1, %s2329_s1 }
   0xe   : > { %s474_s25 = sadd.s32 1, %s2321_s20  ;;  %p46_p0 = scmp.ge.s32.totalorder %s44_s24, 4 }
   0xf   : > { %p484_p1 = scmp.ne.s32.totalorder %s2321_s20, %s2317_s30  ;;  %p485_p2 = scmp.eq.s32.totalorder %s1968_s2, 3 }
  0x10   : > { %p490_p3 = scmp.ne.s32.totalorder %s2317_s30, %s2313_s0  ;;  %s2861_s24 = smov (%p46_p0, %s44_s24), 0 }
  0x11   : > { %2840 = sst [smem:[#allocation11_spill]] %s2861_s24  ;;  %p2480_p4 = por %p485_p2, %p484_p1 }
  0x12   : > { %p491_p5 = scmp.eq.s32.totalorder %s1969_s23, 3  ;;  %s471_s26 = ssub.s32 %s2329_s1, %s2861_s24 }
  0x13   : > { %p1972_p6 = scmp.ge.s32.totalorder %s2333_s22, 1  ;;  %p472_p7 = scmp.eq.s32.totalorder %s471_s26, 0 }
  0x14   : > { %p2487_p8 = por %p491_p5, %p490_p3  ;;  %p592_p9 = scmp.lt.s32.totalorder %s2333_s22, 5 }
  0x15   : > { %s2493_s28 = scalar_select %p472_p7, %s2321_s20, %s474_s25  }
  0x16   : > { %s2842_s27 = scalar_select %p2487_p8, 1, 0 }
  0x17   : > { %2844 = sst [smem:[#allocation13_spill]] %s2493_s28  ;;  %p593_p10 = pnand %p1972_p6, %p592_p9 }
  0x18   : > { %2843 = sst [smem:[#allocation12_spill]] %s2842_s27  ;;  %s2845_s4 = sld [smem:[#allocation18_spill]] (!%p593_p10)  ;;  %v2335_v1 = vmov (!%p593_p10), 0.0   ;;  %vm2336_vm0 = vmmov (!%p593_p10), 0   ;;  %vm727_vm1 = vcmask (!%p593_p10), 261120   ;;  %vm827_vm2 = vcmask (!%p593_p10), 392192  }
  0x19   : > { %596 = sbr.rel (%p593_p10) target bundleno = 1918 (0x77e), region = 96  ;;  %2070 = vmatprep.subr.bf16.mxu0 (!%p593_p10), %v2335_v1  ;;  %s2846_s5 = sld [smem:[#allocation19_spill]] (!%p593_p10)  ;;  %2074 = vmatprep.mubr.msk.bf16.mxu0 (!%p593_p10), %vm2336_vm0, %v2335_v1  ;;  %772 = vst.msk [vmem:[#allocation3] sm:$0xff] (!%p593_p10), %vm727_vm1, %v2335_v1  ;;  %v2337_v6 = vmov (!%p593_p10), 0   ;;  %v2211_v29 = vld [vmem:[%s2812_s7] sm:$0xff] (!%p593_p10)   ;;  %v2212_v32 = vld [vmem:[%s2812_s7 + $0x8] sm:$0xff] (!%p593_p10)   ;;  %v911_v35 = vlaneseq (!%p593_p10) }
  0x1a   : > { %p667_p11 = scmp.lt.s32.totalorder (!%p593_p10), %s2325_s21, 3  ;;  %s1975_s25 = sshll.u32 (!%p593_p10), %s2325_s21, 3  ;;  %2199 = vset.pattern.permute.xlu0 (!%p593_p10), %v2337_v6  ;;  %2200 = vset.pattern.permute.xlu1 (!%p593_p10), %v2337_v6  ;;  %vm773_vm3 = vcmask (!%p593_p10), 7168   ;;  %vm1410_vm4 = vcmask (!%p593_p10), 1041409   ;;  %vm1412_vm5 = vcmask (!%p593_p10), 1042434   ;;  %vm1414_vm6 = vcmask (!%p593_p10), 1043459  }
  0x1b   : > { %p672_p12 = scmp.lt.s32.totalorder (!%p593_p10), %s1975_s25, 31  ;;  %s2847_s1 = sld [smem:[#allocation14_spill]] (!%p593_p10)  ;;  %v912_v38 = vshrl.u32 (!%p593_p10), %v911_v35, 7  ;;  %v1461_v39 = vand.u32 (!%p593_p10), 127, %v911_v35  ;;  %774 = vst.msk [vmem:[#allocation4] sm:$0xff] (!%p593_p10), %vm773_vm3, %v2335_v1  ;;  %vm1416_vm7 = vcmask (!%p593_p10), 1044484  }
  0x1c   : > { %s2848_s27 = sld [smem:[#allocation15_spill]] (!%p593_p10)  ;;  %vm1418_vm8 = vcmask (!%p593_p10), 1045509   ;;  %vm1420_vm9 = vcmask (!%p593_p10), 1046534   ;;  %vm1422_vm10 = vcmask (!%p593_p10), 1047559   ;;  %vm1502_vm11 = vcmask (!%p593_p10), 64512  }
  0x1d   : > { %v1464_v42 = vsub.s32 (!%p593_p10), %v1461_v39, %v912_v38 }
  0x1e   : > { %v2201_v0 = vld [vmem:[%s2845_s4] sm:$0xff] (!%p593_p10)   ;;  %v2202_v2 = vld [vmem:[%s2845_s4 + $0x8] sm:$0xff] (!%p593_p10)  }
  0x1f   : > { %2071 = vmatpush3.bf16.msra.mxu0 (!%p593_p10), %v2201_v0  ;;  %v2203_v3 = vld [vmem:[%s2846_s5] sm:$0xff] (!%p593_p10)   ;;  %v2204_v4 = vld [vmem:[%s2846_s5 + $0x8] sm:$0xff] (!%p593_p10)   ;;  %v2205_v5 = vld [vmem:[%s2846_s5 + $0x10] sm:$0xff] (!%p593_p10)  }
  0x20   : > { %2072 = vmatprep.subr.bf16.mxu0 %v2335_v1  ;;  %2078 = vmatprep.subr.bf16.mxu1 %v2203_v3  ;;  %s2513_s23 = scalar_select %p667_p11, %s2325_s21, 3 }
  0x21   : > { %2079 = vmatpush3.bf16.msra.mxu1 %v2203_v3  ;;  %s2863_s25 = smov (!%p672_p12, %s1975_s25), 31 }
  0x22   : > { %s2829_s4 = sshll.u32 %s2513_s23, 3  ;;  %2080 = vmatprep.subr.bf16.mxu1 %v2204_v4  ;;  %s1976_s24 = sshll.u32 %s2863_s25, 2 }
  0x23   : > { %2073 = vmatpush3.bf16.msra.mxu0 %v2202_v2  ;;  %s670_s28 = scalar_lea.vmem %s2847_s1, %s2829_s4  ;;  %s1978_s26 = sshll.u32 %s2863_s25, 3 }
  0x24   : > { %v2527_v7 = vld [vmem:[%s670_s28] sm:$0xff]  ;;  %s678_s29 = scalar_lea.vmem %s2848_s27, %s1976_s24  ;;  %s2849_s4 = sld [smem:[#allocation16_spill]]  ;;  %2092 = vmatprep.subr.bf16.mxu0 %v2211_v29 }
  0x25   : > { %v703_v8 = vpack.c.bf16 %v2527_v7, %v2527_v7  ;;  %2081 = vmatpush3.bf16.msra.mxu1 %v2204_v4  ;;  %v2206_v9 = vld [vmem:[%s678_s29] sm:$0xff]   ;;  %v2207_v10 = vld [vmem:[%s678_s29 + $0x8] sm:$0xff]   ;;  %v2208_v15 = vld [vmem:[%s678_s29 + $0x10] sm:$0xff]   ;;  %s2851_s28 = sld [smem:[#allocation17_spill]] }
  0x26   : > { %2082 = vmatprep.subr.bf16.mxu1 %v2205_v5  ;;  %2084 = vmatprep.mubr.msk.bf16.mxu1 %vm827_vm2, %v2206_v9  ;;  %v2209_v19 = vld [vmem:[%s678_s29 + $0x18] sm:$0xff]   ;;  %v1980_v4 = vld [vmem:[%s2811_s6] ss:$0 sm:$0xff]  ;;  %s664_s29 = sand.u32 1, %s2317_s30  }
  0x27   : > { %2075 = vmatmul.mubr.msk.bf16.vlgmr.msra.gmra.mrb[0].mxu0 %vm727_vm1, %v703_v8 }
  0x28   : > { %2093 = vmatpush3.bf16.msra.mxu0 %v2211_v29 }
  0x29   : > { %2083 = vmatpush3.bf16.msra.mxu1 %v2205_v5  ;;  %2094 = vmatprep.subr.bf16.mxu0 %v2212_v32  ;;  %v2338_v5 = vmov 1966171168  }
  0x2a   : > { %s687_s0 = scalar_lea.vmem %s2849_s4, %s1978_s26  ;;  %2120 = vmatprep.subr.bf16.mxu1 %v2335_v1  ;;  %v909_v6 = vunpack.c.l.s4 %v2338_v5  ;;  %s1846_s26 = scalar_lea.sflag [#allocation6], %s664_s29 }
  0x2b   : > { %v1273_v11 = vld [vmem:[%s687_s0] sm:$0xff]  ;;  %v1275_v12 = vld [vmem:[%s687_s0 + $0x10] sm:$0xff]  ;;  %v1274_v16 = vld [vmem:[%s687_s0 + $0x8] sm:$0xff] }
  0x2c   : > { %v1281_v13 = vpack.c.bf16 %v1273_v11, %v1273_v11  ;;  %v1283_v14 = vpack.c.bf16 %v1275_v12, %v1275_v12  ;;  %2085 = vmatmul.mubr.msk.bf16.vlgmr.msra.gmra.mrb[0].mxu1 %vm827_vm2, %v2207_v10  ;;  %v1282_v17 = vpack.c.bf16 %v1274_v16, %v1274_v16  ;;  %v1276_v18 = vld [vmem:[%s687_s0 + $0x18] sm:$0xff]  ;;  %v1277_v21 = vld [vmem:[%s687_s0 + $0x20] sm:$0xff]  ;;  %v1278_v22 = vld [vmem:[%s687_s0 + $0x28] sm:$0xff]  ;;  %2095 = vmatpush3.bf16.msra.mxu0 %v2212_v32 }
  0x2d   : > { %2088 = vmatprep.mubr.msk.bf16.mxu1 %vm827_vm2, %v2208_v15  ;;  %v1284_v20 = vpack.c.bf16 %v1276_v18, %v1276_v18  ;;  %v1279_v23 = vld [vmem:[%s687_s0 + $0x30] sm:$0xff]  ;;  %v1285_v24 = vpack.c.bf16 %v1277_v21, %v1277_v21  ;;  %v1286_v25 = vpack.c.bf16 %v1278_v22, %v1278_v22  ;;  %v1280_v26 = vld [vmem:[%s687_s0 + $0x38] sm:$0xff]  ;;  %2104 = vmatprep.subr.bf16.mxu0 %v2335_v1  ;;  %s2850_s0 = sshll.u32 %s2513_s23, 3  ;;  %s1973_s23 = sshll.u32 %s664_s29, 3 }
  0x2e   : > { %1291 = vperm.xlu0 %2199, %v1281_v13   ;;  %1301 = vperm.xlu1 %2200, %v1283_v14   ;;  %v1287_v27 = vpack.c.bf16 %v1279_v23, %v1279_v23  ;;  %v1288_v28 = vpack.c.bf16 %v1280_v26, %v1280_v26  ;;  %v910_v13 = vunpack.c.0.s8 %v909_v6  ;;  %s692_s25 = scalar_lea.vmem %s2851_s28, %s2850_s0  ;;  %s2036_s0 = sshll.u32 %s2325_s21, 7 }
  0x2f   : > { %s666_s20 = scalar_lea.vmem [#allocation5], %s1973_s23  ;;  %s2757_s24 = scalar_lea.hbm %s2824_s19, %s2036_s0 }
  0x30   : > { %s1859_s27 = sshll.u32 %s666_s20, 4  ;;  %s2339_s21 = smov [#allocation5]   ;;  %s2759_s27 = int_to_ptr.vmem [resolvable:$true] %s1859_s27 }
  0x31   : > { %s2255_s1 = scalar_lea.vmem %s2759_s27, 128  ;;  %s2259_s23 = sshll.u32 %s2339_s21, 4  ;;  %s2260_s23 = int_to_ptr.vmem [resolvable:$false] %s2259_s23 }
  0x32   : > { %1296 = vperm.xlu0 %2199, %v1282_v17   ;;  %1306 = vperm.xlu1 %2200, %v1284_v20   ;;  %p2256_p13 = scmp.ne.s32.totalorder %s2759_s27, %s2255_s1  ;;  %s2261_s2 = scalar_lea.vmem %s2260_s23, 256 }
  0x33   : > { %p2262_p2 = scmp.lt.s32.totalorder %s2759_s27, %s2260_s23  ;;  %p2263_p3 = scmp.lt.s32.totalorder %s2261_s2, %s2255_s1 }
  0x34   : > { %2089 = vmatmul.mubr.msk.bf16.gmra.mrb[4].mxu1 %vm827_vm2, %v2209_v19  ;;  %p2257_p0 = pnand %p2256_p13, %p2480_p4 }
  0x35   : > { %2136 = vmatprep.mubr.msk.bf16.mxu1 %vm2336_vm0, %v2335_v1  ;;  %p2264_p5 = por %p2263_p3, %p2262_p2 }
  0x36   : > { %1311 = vperm.xlu0 %2199, %v1285_v24   ;;  %1316 = vperm.xlu1 %2200, %v1286_v25   ;;  %p2258_p1 = pneg %p2257_p0 }
  0x38   : > { %p2265_p6 = pnand %p2264_p5, %p2258_p1 }
  0x3a   : > { %1321 = vperm.xlu0 %2199, %v1287_v27   ;;  %1326 = vperm.xlu1 %2200, %v1288_v28  }
  0x3e   : > { %1437 = vperm.xlu0 %2199, %v1273_v11   ;;  %1440 = vperm.xlu1 %2200, %v1274_v16   ;;  %v913_v16 = vsub.s32 %v910_v13, %v912_v38 }
  0x42   : > { %1443 = vperm.xlu0 %2199, %v1275_v12   ;;  %1446 = vperm.xlu1 %2200, %v1276_v18  }
  0x46   : > { %1449 = vperm.xlu0 %2199, %v1277_v21   ;;  %1452 = vperm.xlu1 %2200, %v1278_v22   ;;  %v958_v21 = vsub.s32 0, %v912_v38 }
  0x4a   : > { %1455 = vperm.xlu0 %2199, %v1279_v23   ;;  %1458 = vperm.xlu1 %2200, %v1280_v26  }
  0xad   : > { %v2548_v30 = vpop.permute.xlu0 %1291  ;;  %v2550_v31 = vpop.permute.xlu1 %1301 }
  0xb1   : > { %v2555_v33 = vpop.permute.xlu0 %1296  ;;  %v2557_v34 = vpop.permute.xlu1 %1306 }
  0xb5   : > { %v2560_v36 = vpop.permute.xlu0 %1311  ;;  %v2562_v37 = vpop.permute.xlu1 %1316 }
  0xb9   : > { %v2564_v40 = vpop.permute.xlu0 %1321  ;;  %v2566_v41 = vpop.permute.xlu1 %1326 }
  0xbd   : > { %v1438_v43 = vpop.permute.xlu0 %1437  ;;  %v1441_v44 = vpop.permute.xlu1 %1440 }
  0xbe   : > { %v1465_v45 = vrot.slane %v1438_v43, %v1464_v42  ;;  %v1469_v46 = vrot.slane %v1441_v44, %v1464_v42 }
  0xc0   : > { %v1494_v47 = vsel %vm1410_vm4, %v1469_v46, %v1465_v45 }
  0xc1   : > { %v1444_v48 = vpop.permute.xlu0 %1443  ;;  %v1447_v49 = vpop.permute.xlu1 %1446 }
  0xc2   : > { %v1473_v50 = vrot.slane %v1444_v48, %v1464_v42  ;;  %v1477_v51 = vrot.slane %v1447_v49, %v1464_v42 }
  0xc4   : > { %v1495_v52 = vsel %vm1412_vm5, %v1473_v50, %v1494_v47 }
  0xc5   : > { %v1496_v53 = vsel %vm1414_vm6, %v1477_v51, %v1495_v52  ;;  %v1450_v54 = vpop.permute.xlu0 %1449  ;;  %v1453_v55 = vpop.permute.xlu1 %1452 }
  0xc6   : > { %v1481_v56 = vrot.slane %v1450_v54, %v1464_v42  ;;  %v1485_v57 = vrot.slane %v1453_v55, %v1464_v42 }
  0xc8   : > { %v1497_v58 = vsel %vm1416_vm7, %v1481_v56, %v1496_v53 }
  0xc9   : > { %v1498_v59 = vsel %vm1418_vm8, %v1485_v57, %v1497_v58  ;;  %v1456_v60 = vpop.permute.xlu0 %1455  ;;  %v1459_v61 = vpop.permute.xlu1 %1458 }
  0xca   : > { %v1489_v62 = vrot.slane %v1456_v60, %v1464_v42  ;;  %v1493_v63 = vrot.slane %v1459_v61, %v1464_v42 }
  0xcc   : > { %v1499_v0 = vsel %vm1420_vm9, %v1489_v62, %v1498_v59 }
  0xcd   : > { %v1500_v2 = vsel %vm1422_vm10, %v1493_v63, %v1499_v0 }
  0xce   : > { %v1503_v3 = vsel %vm1502_vm11, %v1500_v2, 0.0 }
  0xcf   : > { %1504 = vadd.xlane.f32.xlu0 %v1503_v3 }
  0xfa   : > { %v765_v8 = vpop.f32.mrb[0].mxu0 }
  0xfb   : > { %v766_v9 = vadd.f32 %v1980_v4, %v765_v8  ;;  %v2076_v10 = vpop.f32.mrb[1].mxu0 }
  0xfc   : > { %v768_v11 = vpop.f32.mrb[2].mxu0 }
  0xfd   : > { %771 = vst.msk [vmem:[#allocation2] sm:$0xff] %vm727_vm1, %v766_v9  ;;  %v2077_v12 = vpop.f32.mrb[3].mxu0 }
  0xff   : > { %v2086_v14 = vpop.f32.mrb[0].mxu1 }
 0x100   : > { %v874_v15 = vpop.f32.mrb[1].mxu1 }
 0x101   : > { %v2087_v17 = vpop.f32.mrb[2].mxu1 }
 0x102   : > { %v877_v18 = vpop.f32.mrb[3].mxu1 }
 0x104   : > { %v905_v19 = vld [vmem:[#allocation2] sm:$0xff] }
 0x105   : > { %v914_v20 = vrot.slane %v905_v19, %v913_v16  ;;  %v907_v22 = vcombine.high %v905_v19, %v905_v19 }
 0x107   : > { %v930_v23 = vrot.slane %v914_v20, %v913_v16  ;;  %v922_v24 = vcombine.high %v914_v20, %v914_v20  ;;  %v2090_v25 = vpop.f32.mrb[4].mxu1  ;;  %v921_v26 = vrot.slane %v907_v22, %v913_v16 }
 0x108   : > { %v890_v27 = vpop.f32.mrb[5].mxu1 }
 0x109   : > { %v952_v28 = vcombine.high %v930_v23, %v930_v23  ;;  %v959_v29 = vrot.slane %v930_v23, %v958_v21  ;;  %v944_v32 = vrot.slane %v922_v24, %v913_v16  ;;  %v937_v35 = vrot.slane %v921_v26, %v913_v16  ;;  %v2091_v39 = vpop.f32.mrb[6].mxu1 }
 0x10a   : > { %v923_v42 = vcombine.high %v921_v26, %v921_v26  ;;  %v893_v43 = vpop.f32.mrb[7].mxu1 }
 0x10b   : > { %v967_v44 = vrot.slane %v952_v28, %v958_v21  ;;  %v996_v45 = vadd.f32 %v959_v29, %v874_v15  ;;  %v954_v46 = vcombine.high %v944_v32, %v944_v32  ;;  %v963_v47 = vrot.slane %v944_v32, %v958_v21 }
 0x10c   : > { %v953_v48 = vcombine.high %v937_v35, %v937_v35  ;;  %v975_v49 = vrot.slane %v937_v35, %v958_v21  ;;  %v951_v38 = vrot.slane %v923_v42, %v913_v16 }
 0x10d   : > { %v998_v50 = vadd.f32 %v2086_v14, %v967_v44  ;;  %v2581_v51 = vpack.c.bf16 %v996_v45, %v996_v45  ;;  %v971_v52 = vrot.slane %v954_v46, %v958_v21  ;;  %v997_v53 = vadd.f32 %v963_v47, %v877_v18 }
 0x10e   : > { %v983_v54 = vrot.slane %v953_v48, %v958_v21  ;;  %v1000_v55 = vadd.f32 %v975_v49, %v890_v27  ;;  %v955_v56 = vcombine.high %v951_v38, %v951_v38  ;;  %v979_v57 = vrot.slane %v951_v38, %v958_v21 }
 0x10f   : > { %v2583_v58 = vpack.c.bf16 %v998_v50, %v998_v50  ;;  %v1012_v59 = vmul.bf16 %v2581_v51, %v2581_v51  ;;  %v999_v60 = vadd.f32 %v2087_v17, %v971_v52  ;;  %v2587_v61 = vpack.c.bf16 %v997_v53, %v997_v53 }
 0x110   : > { %v1002_v62 = vadd.f32 %v2090_v25, %v983_v54  ;;  %v2589_v63 = vpack.c.bf16 %v1000_v55, %v1000_v55  ;;  %v987_v0 = vrot.slane %v955_v56, %v958_v21  ;;  %v1001_v2 = vadd.f32 %v979_v57, %v893_v43 }
 0x111   : > { %v1014_v3 = vmul.bf16 %v2583_v58, %v2583_v58  ;;  %v1020_v4 = vmul.bf16 %v1012_v59, %v2581_v51  ;;  %v2594_v5 = vpack.c.bf16 %v999_v60, %v999_v60  ;;  %v1013_v6 = vmul.bf16 %v2587_v61, %v2587_v61 }
 0x112   : > { %v2598_v8 = vpack.c.bf16 %v1002_v62, %v1002_v62  ;;  %v1016_v9 = vmul.bf16 %v2589_v63, %v2589_v63  ;;  %v1003_v10 = vadd.f32 %v2091_v39, %v987_v0  ;;  %v2602_v11 = vpack.c.bf16 %v1001_v2, %v1001_v2 }
 0x113   : > { %v1022_v12 = vmul.bf16 %v1014_v3, %v2583_v58  ;;  %v1028_v13 = vmul.bf16 1027030327, %v1020_v4  ;;  %v1015_v14 = vmul.bf16 %v2594_v5, %v2594_v5  ;;  %v1021_v15 = vmul.bf16 %v1013_v6, %v2587_v61 }
 0x114   : > { %v1018_v16 = vmul.bf16 %v2598_v8, %v2598_v8  ;;  %v1024_v17 = vmul.bf16 %v1016_v9, %v2589_v63  ;;  %v2611_v18 = vpack.c.bf16 %v1003_v10, %v1003_v10  ;;  %v1017_v19 = vmul.bf16 %v2602_v11, %v2602_v11 }
 0x115   : > { %v1030_v20 = vmul.bf16 1027030327, %v1022_v12  ;;  %v1036_v21 = vadd.bf16 %v1028_v13, %v2581_v51  ;;  %v1023_v22 = vmul.bf16 %v1015_v14, %v2594_v5  ;;  %v1029_v23 = vmul.bf16 1027030327, %v1021_v15 }
 0x116   : > { %v1026_v24 = vmul.bf16 %v1018_v16, %v2598_v8  ;;  %v1032_v25 = vmul.bf16 1027030327, %v1024_v17  ;;  %v1019_v26 = vmul.bf16 %v2611_v18, %v2611_v18  ;;  %v1025_v27 = vmul.bf16 %v1017_v19, %v2602_v11 }
 0x117   : > { %v1038_v28 = vadd.bf16 %v1030_v20, %v2583_v58  ;;  %v1044_v29 = vmul.bf16 1061961548, %v1036_v21  ;;  %v1031_v32 = vmul.bf16 1027030327, %v1023_v22  ;;  %v1037_v35 = vadd.bf16 %v1029_v23, %v2587_v61 }
 0x118   : > { %v1034_v39 = vmul.bf16 1027030327, %v1026_v24  ;;  %v1040_v42 = vadd.bf16 %v1032_v25, %v2589_v63  ;;  %v1027_v43 = vmul.bf16 %v1019_v26, %v2611_v18  ;;  %v1033_v44 = vmul.bf16 1027030327, %v1025_v27 }
 0x119   : > { %v1046_v45 = vmul.bf16 1061961548, %v1038_v28  ;;  %2225 = vtanh.bf16 %v1044_v29  ;;  %v1039_v46 = vadd.bf16 %v1031_v32, %v2594_v5  ;;  %v1045_v47 = vmul.bf16 1061961548, %v1037_v35 }
 0x11a   : > { %v1042_v48 = vadd.bf16 %v1034_v39, %v2598_v8  ;;  %v1035_v49 = vmul.bf16 1027030327, %v1027_v43  ;;  %v1041_v38 = vadd.bf16 %v1033_v44, %v2602_v11  ;;  %v1048_v52 = vmul.bf16 1061961548, %v1040_v42 }
 0x11b   : > { %2227 = vtanh.bf16 %v1046_v45  ;;  %v1047_v50 = vmul.bf16 1061961548, %v1039_v46  ;;  %v1995_v46 = vld [vmem:[%s2813_s8] ss:$0 sm:$0xff] }
 0x11c   : > { %2229 = vtanh.bf16 %v1045_v47  ;;  %v1050_v53 = vmul.bf16 1061961548, %v1042_v48  ;;  %v1043_v54 = vadd.bf16 %v1035_v49, %v2611_v18  ;;  %v1049_v55 = vmul.bf16 1061961548, %v1041_v38 }
 0x11d   : > { %2231 = vtanh.bf16 %v1047_v50 }
 0x11e   : > { %2233 = vtanh.bf16 %v1050_v53  ;;  %v1051_v56 = vmul.bf16 1061961548, %v1043_v54 }
 0x11f   : > { %2235 = vtanh.bf16 %v1048_v52 }
 0x120   : > { %2237 = vtanh.bf16 %v1051_v56 }
 0x121   : > { %2239 = vtanh.bf16 %v1049_v55 }
 0x124   : > { %v2226_v57 = vpop.eup %2225 }
 0x125   : > { %v1060_v59 = vadd.bf16 1065369472, %v2226_v57 }
 0x126   : > { %v2228_v60 = vpop.eup %2227 }
 0x127   : > { %v2230_v62 = vpop.eup %2229  ;;  %v1062_v0 = vadd.bf16 1065369472, %v2228_v60  ;;  %v1068_v3 = vmul.bf16 1056980736, %v1060_v59 }
 0x128   : > { %v2232_v2 = vpop.eup %2231  ;;  %v1061_v4 = vadd.bf16 1065369472, %v2230_v62 }
 0x129   : > { %v2234_v6 = vpop.eup %2233  ;;  %v1070_v9 = vmul.bf16 1056980736, %v1062_v0  ;;  %v1063_v10 = vadd.bf16 1065369472, %v2232_v2  ;;  %v1076_v20 = vmul.bf16 %v1068_v3, %v2581_v51 }
 0x12a   : > { %v2236_v12 = vpop.eup %2235  ;;  %v1069_v13 = vmul.bf16 1056980736, %v1061_v4  ;;  %v1066_v14 = vadd.bf16 1065369472, %v2234_v6 }
 0x12b   : > { %v2238_v15 = vpop.eup %2237  ;;  %v1071_v16 = vmul.bf16 1056980736, %v1063_v10  ;;  %v1064_v17 = vadd.bf16 1065369472, %v2236_v12  ;;  %v1078_v24 = vmul.bf16 %v1070_v9, %v2583_v58 }
 0x12c   : > { %v2240_v19 = vpop.eup %2239  ;;  %v1077_v21 = vmul.bf16 %v1069_v13, %v2587_v61  ;;  %v1074_v22 = vmul.bf16 1056980736, %v1066_v14  ;;  %v1067_v23 = vadd.bf16 1065369472, %v2238_v15 }
 0x12d   : > { %v1079_v25 = vmul.bf16 %v1071_v16, %v2594_v5  ;;  %v1072_v26 = vmul.bf16 1056980736, %v1064_v17  ;;  %v1065_v27 = vadd.bf16 1065369472, %v2240_v19 }
 0x12e   : > { %v1075_v28 = vmul.bf16 1056980736, %v1067_v23  ;;  %v1996_v29 = vcombine.low %v1076_v20, %v1077_v21  ;;  %v1082_v39 = vmul.bf16 %v1074_v22, %v2598_v8  ;;  %v1427_v8 = vld [vmem:[#allocation4] sm:$0xff] }
 0x12f   : > { %v1997_v32 = vcombine.low %v1078_v24, %v1079_v25  ;;  %v1073_v35 = vmul.bf16 1056980736, %v1065_v27  ;;  %v1080_v51 = vmul.bf16 %v1072_v26, %v2589_v63  ;;  %v2213_v63 = vld [vmem:[%s2814_s9] sm:$0xff]  }
 0x130   : > { %v1083_v42 = vmul.bf16 %v1075_v28, %v2611_v18  ;;  %2096 = vmatprep.mubr.msk.bf16.mxu0 %vm727_vm1, %v1996_v29 }
 0x131   : > { %v1081_v61 = vmul.bf16 %v1073_v35, %v2602_v11  ;;  %2097 = vmatmul.mubr.msk.bf16.vlgmr.msra.gmra.mrb[4].mxu0 %vm727_vm1, %v1997_v32  ;;  %v2214_v11 = vld [vmem:[%s2814_s9 + $0x8] sm:$0xff]  }
 0x132   : > { %v1999_v58 = vcombine.low %v1082_v39, %v1083_v42  ;;  %2105 = vmatpush3.bf16.msra.mxu0 %v2213_v63 }
 0x133   : > { %v1998_v5 = vcombine.low %v1080_v51, %v1081_v61  ;;  %2106 = vmatprep.subr.bf16.mxu0 %v2335_v1 }
 0x135   : > { %2100 = vmatprep.mubr.msk.bf16.mxu0 %vm727_vm1, %v1998_v5 }
 0x136   : > { %2107 = vmatpush3.bf16.msra.mxu0 %v2214_v11 }
 0x137   : > { %2112 = vmatprep.subr.bf16.mxu0 %v2335_v1 }
 0x139   : > { %2101 = vmatmul.mubr.msk.bf16.gmra.mrb[8].mxu0 %vm727_vm1, %v1999_v58 }
 0x13a   : > { %2108 = vmatprep.mubr.msk.bf16.mxu0 %vm2336_vm0, %v2335_v1 }
 0x15c   : > { %v1505_v43 = vpop.xlane.xlu0 %1504 }
 0x15d   : > { %v1506_v18 = vadd.f32 %v1505_v43, %v1427_v8 }
 0x15f   : > { %1508 = vst.msk [vmem:[#allocation4] sm:$0xff] %vm773_vm3, %v1506_v18 }
 0x166   : > { %v1519_v44 = vld [vmem:[#allocation4] sm:$0xff] }
 0x167   : > { %1523 = vperm.xlu1 %2200, %v1519_v44  }
 0x204   : > { %v2098_v45 = vpop.f32.mrb[4].mxu0 }
 0x205   : > { %v1174_v47 = vpop.f32.mrb[5].mxu0  ;;  %v1183_v49 = vadd.f32 %v2098_v45, %v1995_v46 }
 0x206   : > { %v2099_v48 = vpop.f32.mrb[6].mxu0  ;;  %v1175_v52 = vadd.f32 %v1995_v46, %v1174_v47 }
 0x207   : > { %v1186_v38 = vadd.f32 %v2099_v48, %v1995_v46  ;;  %v1177_v50 = vpop.f32.mrb[7].mxu0 }
 0x208   : > { %v1178_v53 = vadd.f32 %v1995_v46, %v1177_v50 }
 0x209   : > { %v1206_v54 = vpack.c.bf16 %v1186_v38, %v1183_v49 }
 0x20a   : > { %v1205_v55 = vpack.c.bf16 %v1178_v53, %v1175_v52 }
 0x20b   : > { %v1210_v56 = vmul.bf16 %v1206_v54, %v1206_v54 }
 0x20c   : > { %v1209_v57 = vmul.bf16 %v1205_v55, %v1205_v55  ;;  %v2102_v59 = vpop.f32.mrb[8].mxu0 }
 0x20d   : > { %v1214_v60 = vmul.bf16 %v1210_v56, %v1206_v54  ;;  %v1190_v62 = vpop.f32.mrb[9].mxu0  ;;  %v1199_v4 = vadd.f32 %v2102_v59, %v1995_v46 }
 0x20e   : > { %v1213_v0 = vmul.bf16 %v1209_v57, %v1205_v55  ;;  %v2103_v2 = vpop.f32.mrb[10].mxu0  ;;  %v1191_v12 = vadd.f32 %v1995_v46, %v1190_v62 }
 0x20f   : > { %v1218_v3 = vmul.bf16 1027030327, %v1214_v60  ;;  %v1202_v6 = vadd.f32 %v2103_v2, %v1995_v46  ;;  %v1193_v9 = vpop.f32.mrb[11].mxu0 }
 0x210   : > { %v1217_v10 = vmul.bf16 1027030327, %v1213_v0  ;;  %v1194_v13 = vadd.f32 %v1995_v46, %v1193_v9 }
 0x211   : > { %v1222_v14 = vadd.bf16 %v1218_v3, %v1206_v54  ;;  %v1208_v15 = vpack.c.bf16 %v1202_v6, %v1199_v4 }
 0x212   : > { %v1221_v16 = vadd.bf16 %v1217_v10, %v1205_v55  ;;  %v1207_v17 = vpack.c.bf16 %v1194_v13, %v1191_v12 }
 0x213   : > { %v1226_v19 = vmul.bf16 1061961548, %v1222_v14  ;;  %v1212_v20 = vmul.bf16 %v1208_v15, %v1208_v15 }
 0x214   : > { %v1225_v21 = vmul.bf16 1061961548, %v1221_v16  ;;  %v1211_v22 = vmul.bf16 %v1207_v17, %v1207_v17 }
 0x215   : > { %2241 = vtanh.bf16 %v1226_v19  ;;  %v1216_v23 = vmul.bf16 %v1212_v20, %v1208_v15 }
 0x216   : > { %2243 = vtanh.bf16 %v1225_v21  ;;  %v1215_v24 = vmul.bf16 %v1211_v22, %v1207_v17 }
 0x217   : > { %v1220_v25 = vmul.bf16 1027030327, %v1216_v23 }
 0x218   : > { %v1219_v26 = vmul.bf16 1027030327, %v1215_v24 }
 0x219   : > { %v1224_v27 = vadd.bf16 %v1220_v25, %v1208_v15 }
 0x21a   : > { %v1223_v28 = vadd.bf16 %v1219_v26, %v1207_v17 }
 0x21b   : > { %v1228_v29 = vmul.bf16 1061961548, %v1224_v27 }
 0x21c   : > { %v1227_v32 = vmul.bf16 1061961548, %v1223_v28 }
 0x21d   : > { %2245 = vtanh.bf16 %v1228_v29 }
 0x21e   : > { %2247 = vtanh.bf16 %v1227_v32 }
 0x220   : > { %v2242_v35 = vpop.eup %2241 }
 0x221   : > { %v2244_v39 = vpop.eup %2243  ;;  %v1234_v42 = vadd.bf16 1065369472, %v2242_v35 }
 0x222   : > { %v1233_v51 = vadd.bf16 1065369472, %v2244_v39 }
 0x223   : > { %v1238_v61 = vmul.bf16 1056980736, %v1234_v42 }
 0x224   : > { %v1237_v58 = vmul.bf16 1056980736, %v1233_v51 }
 0x225   : > { %v1242_v5 = vmul.bf16 %v1238_v61, %v1206_v54 }
 0x226   : > { %v1241_v8 = vmul.bf16 %v1237_v58, %v1205_v55 }
 0x227   : > { %v2008_v43 = vcombine.low %v1242_v5, %v1242_v5  ;;  %v2009_v18 = vcombine.high %v1242_v5, %v1242_v5 }
 0x228   : > { %v2246_v44 = vpop.eup %2245  ;;  %v2006_v63 = vcombine.low %v1241_v8, %v1241_v8  ;;  %v2007_v11 = vcombine.high %v1241_v8, %v1241_v8 }
 0x229   : > { %v2248_v45 = vpop.eup %2247  ;;  %v1331_v46 = vmul.bf16 %v2008_v43, %v2550_v31  ;;  %v1332_v47 = vmul.bf16 %v2009_v18, %v2557_v34  ;;  %v1236_v48 = vadd.bf16 1065369472, %v2246_v44 }
 0x22a   : > { %v1329_v49 = vmul.bf16 %v2006_v63, %v2548_v30  ;;  %v1330_v38 = vmul.bf16 %v2007_v11, %v2555_v33  ;;  %v1235_v50 = vadd.bf16 1065369472, %v2248_v45 }
 0x22b   : > { %v1340_v52 = vunpack.c.l.bf16 %v1331_v46  ;;  %v1341_v53 = vunpack.c.l.bf16 %v1332_v47  ;;  %v1240_v54 = vmul.bf16 1056980736, %v1236_v48 }
 0x22c   : > { %v1338_v55 = vunpack.c.l.bf16 %v1329_v49  ;;  %v1339_v56 = vunpack.c.l.bf16 %v1330_v38  ;;  %v1239_v57 = vmul.bf16 1056980736, %v1235_v50 }
 0x22d   : > { %v1360_v59 = vsel %vm727_vm1, %v1340_v52, 0.0  ;;  %v1367_v60 = vsel %vm727_vm1, %v1341_v53, 0.0  ;;  %v1244_v62 = vmul.bf16 %v1240_v54, %v1208_v15 }
 0x22e   : > { %v1361_v31 = vrot.slane %v1360_v59, 4  ;;  %v1368_v0 = vrot.slane %v1367_v60, 4  ;;  %v1346_v34 = vsel %vm727_vm1, %v1338_v55, 0.0  ;;  %v1353_v30 = vsel %vm727_vm1, %v1339_v56, 0.0 }
 0x22f   : > { %v1347_v2 = vrot.slane %v1346_v34, 4  ;;  %v1354_v33 = vrot.slane %v1353_v30, 4  ;;  %v2012_v3 = vcombine.low %v1244_v62, %v1244_v62  ;;  %v2013_v4 = vcombine.high %v1244_v62, %v1244_v62 }
 0x230   : > { %v1362_v6 = vadd.f32 %v1361_v31, %v1360_v59  ;;  %v1369_v9 = vadd.f32 %v1368_v0, %v1367_v60  ;;  %v1243_v10 = vmul.bf16 %v1239_v57, %v1207_v17 }
 0x231   : > { %v1348_v12 = vadd.f32 %v1347_v2, %v1346_v34  ;;  %v1355_v13 = vadd.f32 %v1354_v33, %v1353_v30  ;;  %v1335_v14 = vmul.bf16 %v2012_v3, %v2564_v40  ;;  %v1336_v16 = vmul.bf16 %v2013_v4, %v2566_v41 }
 0x232   : > { %v1363_v15 = vrot.slane %v1362_v6, 2  ;;  %v1370_v19 = vrot.slane %v1369_v9, 2  ;;  %v2010_v20 = vcombine.low %v1243_v10, %v1243_v10  ;;  %v2011_v21 = vcombine.high %v1243_v10, %v1243_v10 }
 0x233   : > { %v1349_v22 = vrot.slane %v1348_v12, 2  ;;  %v1356_v23 = vrot.slane %v1355_v13, 2  ;;  %v1344_v24 = vunpack.c.l.bf16 %v1335_v14  ;;  %v1345_v25 = vunpack.c.l.bf16 %v1336_v16 }
 0x234   : > { %v1364_v26 = vadd.f32 %v1363_v15, %v1362_v6  ;;  %v1371_v27 = vadd.f32 %v1370_v19, %v1369_v9  ;;  %v1333_v28 = vmul.bf16 %v2010_v20, %v2560_v36  ;;  %v1334_v17 = vmul.bf16 %v2011_v21, %v2562_v37  ;;  %v1337_v9 = vld [vmem:[#allocation3] sm:$0xff]  ;;  %v2014_v19 = vld [vmem:[%s2815_s10] ss:$0 sm:$0xff]  ;;  %v1524_v20 = vpop.permute.xlu1 %1523 }
 0x235   : > { %v1350_v29 = vadd.f32 %v1349_v22, %v1348_v12  ;;  %v1357_v32 = vadd.f32 %v1356_v23, %v1355_v13  ;;  %v1388_v40 = vsel %vm727_vm1, %v1344_v24, 0.0  ;;  %v1395_v41 = vsel %vm727_vm1, %v1345_v25, 0.0 }
 0x236   : > { %v1365_v35 = vrot.slane %v1364_v26, 1  ;;  %v1372_v39 = vrot.slane %v1371_v27, 1  ;;  %v1389_v42 = vrot.slane %v1388_v40, 4  ;;  %v1396_v51 = vrot.slane %v1395_v41, 4 }
 0x237   : > { %v1351_v61 = vrot.slane %v1350_v29, 1  ;;  %v1358_v58 = vrot.slane %v1357_v32, 1  ;;  %v1342_v5 = vunpack.c.l.bf16 %v1333_v28  ;;  %v1343_v8 = vunpack.c.l.bf16 %v1334_v17  ;;  %v1837_v17 = vld [vmem:[%s692_s25] sm:$0xff] }
 0x238   : > { %v1390_v43 = vadd.f32 %v1389_v42, %v1388_v40  ;;  %v1397_v18 = vadd.f32 %v1396_v51, %v1395_v41  ;;  %v1366_v11 = vadd.f32 %v1365_v35, %v1364_v26  ;;  %v1373_v48 = vadd.f32 %v1372_v39, %v1371_v27  ;;  %v2216_v39 = vld [vmem:[%s2818_s13 + $0x8] sm:$0xff]  }
 0x239   : > { %v1352_v44 = vadd.f32 %v1351_v61, %v1350_v29  ;;  %v1359_v36 = vadd.f32 %v1358_v58, %v1357_v32  ;;  %v1374_v37 = vsel %vm727_vm1, %v1342_v5, 0.0  ;;  %v1381_v63 = vsel %vm727_vm1, %v1343_v8, 0.0  ;;  %v2018_v5 = vld [vmem:[%s2816_s11] ss:$0 sm:$0xff] }
 0x23a   : > { %v1391_v45 = vrot.slane %v1390_v43, 2  ;;  %v1375_v46 = vrot.slane %v1374_v37, 4  ;;  %v1382_v47 = vrot.slane %v1381_v63, 4  ;;  %v1398_v38 = vrot.slane %v1397_v18, 2 }
 0x23b   : > { %v1411_v49 = vsel %vm1410_vm4, %v1359_v36, %v1352_v44  ;;  %v1532_v21 = vmul.f32 %v2014_v19, %v1524_v20 }
 0x23c   : > { %v1413_v50 = vsel %vm1412_vm5, %v1366_v11, %v1411_v49  ;;  %v1376_v52 = vadd.f32 %v1375_v46, %v1374_v37  ;;  %v1383_v53 = vadd.f32 %v1382_v47, %v1381_v63  ;;  %v1392_v55 = vadd.f32 %v1391_v45, %v1390_v43  ;;  %v2019_v43 = vld [vmem:[%s2817_s12] ss:$0 sm:$0xff]  ;;  %v2218_v63 = vld [vmem:[%s2820_s15 + $0x8] sm:$0xff]   ;;  %v2219_v11 = vld [vmem:[%s2820_s15 + $0x10] sm:$0xff]  }
 0x23d   : > { %v1415_v54 = vsel %vm1414_vm6, %v1373_v48, %v1413_v50  ;;  %v1399_v57 = vadd.f32 %v1398_v38, %v1397_v18  ;;  %v2217_v37 = vld [vmem:[%s2820_s15] sm:$0xff]   ;;  %v2220_v45 = vld [vmem:[%s2820_s15 + $0x18] sm:$0xff]   ;;  %v2222_v47 = vld [vmem:[%s2820_s15 + $0x28] sm:$0xff]  }
 0x23e   : > { %v1377_v56 = vrot.slane %v1376_v52, 2  ;;  %v1384_v59 = vrot.slane %v1383_v53, 2  ;;  %v1393_v31 = vrot.slane %v1392_v55, 1  ;;  %2121 = vmatpush3.bf16.msra.mxu1 %v2217_v37  ;;  %v2221_v46 = vld [vmem:[%s2820_s15 + $0x20] sm:$0xff]   ;;  %v2223_v48 = vld [vmem:[%s2820_s15 + $0x30] sm:$0xff]   ;;  %v2224_v49 = vld [vmem:[%s2820_s15 + $0x38] sm:$0xff]  }
 0x23f   : > { %v1400_v34 = vrot.slane %v1399_v57, 1  ;;  %2122 = vmatprep.subr.bf16.mxu1 %v2335_v1  ;;  %v2020_v38 = vld [vmem:[%s2819_s14] ss:$0 sm:$0xff] }
 0x240   : > { %v1378_v60 = vadd.f32 %v1377_v56, %v1376_v52  ;;  %v1385_v62 = vadd.f32 %v1384_v59, %v1383_v53  ;;  %v1394_v3 = vadd.f32 %v1393_v31, %v1392_v55 }
 0x241   : > { %v1401_v6 = vadd.f32 %v1400_v34, %v1399_v57 }
 0x242   : > { %v1379_v0 = vrot.slane %v1378_v60, 1  ;;  %v1386_v30 = vrot.slane %v1385_v62, 1  ;;  %2123 = vmatpush3.bf16.msra.mxu1 %v2218_v63 }
 0x243   : > { %2124 = vmatprep.subr.bf16.mxu1 %v2335_v1 }
 0x244   : > { %v1380_v2 = vadd.f32 %v1379_v0, %v1378_v60  ;;  %v1387_v33 = vadd.f32 %v1386_v30, %v1385_v62 }
 0x246   : > { %v1417_v4 = vsel %vm1416_vm7, %v1380_v2, %v1415_v54  ;;  %2125 = vmatpush3.bf16.msra.mxu1 %v2219_v11  ;;  %v2024_v2 = vld [vmem:[%s2821_s16] ss:$0 sm:$0xff] }
 0x247   : > { %v1419_v10 = vsel %vm1418_vm8, %v1387_v33, %v1417_v4  ;;  %2126 = vmatprep.subr.bf16.mxu1 %v2335_v1 }
 0x248   : > { %v1421_v12 = vsel %vm1420_vm9, %v1394_v3, %v1419_v10 }
 0x249   : > { %v1423_v13 = vsel %vm1422_vm10, %v1401_v6, %v1421_v12 }
 0x24a   : > { %v1425_v14 = vadd.f32 %v1423_v13, %v1337_v9  ;;  %2127 = vmatpush3.bf16.msra.mxu1 %v2220_v45 }
 0x24b   : > { %2128 = vmatprep.subr.bf16.mxu1 %v2335_v1 }
 0x24c   : > { %1426 = vst.msk [vmem:[#allocation3] sm:$0xff] %vm727_vm1, %v1425_v14 }
 0x24e   : > { %2129 = vmatpush3.bf16.msra.mxu1 %v2221_v46 }
 0x24f   : > { %2130 = vmatprep.subr.bf16.mxu1 %v2335_v1 }
 0x252   : > { %2131 = vmatpush3.bf16.msra.mxu1 %v2222_v47 }
 0x253   : > { %v1513_v16 = vld [vmem:[#allocation3] sm:$0xff]  ;;  %2132 = vmatprep.subr.bf16.mxu1 %v2335_v1 }
 0x254   : > { %v1514_v15 = vpack.c.bf16 %v1513_v16, %v1513_v16 }
 0x256   : > { %2109 = vmatmul.mubr.msk.bf16.vlgmr.msra.gmra.mrb[12].mxu0 %vm727_vm1, %v1514_v15  ;;  %2133 = vmatpush3.bf16.msra.mxu1 %v2223_v48 }
 0x257   : > { %2116 = vmatprep.mubr.msk.bf16.mxu0 %vm2336_vm0, %v2335_v1  ;;  %2134 = vmatprep.subr.bf16.mxu1 %v2335_v1 }
 0x25a   : > { %2135 = vmatpush3.bf16.msra.mxu1 %v2224_v49 }
 0x329   : > { %v1582_v22 = vpop.f32.mrb[12].mxu0 }
 0x32a   : > { %v1583_v23 = vadd.f32 %v1582_v22, %v1532_v21  ;;  %v2110_v24 = vpop.f32.mrb[13].mxu0 }
 0x32b   : > { %v1585_v25 = vpop.f32.mrb[14].mxu0  ;;  %v2033_v24 = vld [vmem:[%s2822_s17] ss:$0 sm:$0xff] }
 0x32c   : > { %v2111_v26 = vpop.f32.mrb[15].mxu0  ;;  %v1588_v27 = vadd.f32 %v1583_v23, %v2527_v7  ;;  %v2215_v7 = vld [vmem:[%s2818_s13] sm:$0xff]  }
 0x32d   : > { %2113 = vmatpush3.bf16.msra.mxu0 %v2215_v7  ;;  %v2034_v26 = vld [vmem:[%s2823_s18] ss:$0 sm:$0xff] }
 0x32e   : > { %v1591_v28 = vsel %vm727_vm1, %v1588_v27, 0.0  ;;  %2114 = vmatprep.subr.bf16.mxu0 %v2335_v1 }
 0x32f   : > { %1592 = vadd.xlane.f32.xlu1 %v1591_v28 }
 0x331   : > { %2115 = vmatpush3.bf16.msra.mxu0 %v2216_v39 }
 0x340   : > { %1840 = vperm.xlu1 %2200, %v1837_v17  }
 0x3bc   : > { %v1593_v29 = vpop.xlane.xlu1 %1592 }
 0x3bd   : > { %v1595_v32 = vmul.f32 0.03125, %v1593_v29 }
 0x3bf   : > { %v1596_v40 = vsub.f32 %v1588_v27, %v1595_v32 }
 0x3c0   : > { %v1841_v17 = vpop.permute.xlu1 %1840 }
 0x3c1   : > { %v1597_v41 = vmul.f32 %v1596_v40, %v1596_v40 }
 0x3c3   : > { %v1598_v35 = vsel %vm727_vm1, %v1597_v41, 0.0 }
 0x3c4   : > { %1599 = vadd.xlane.f32.xlu0 %v1598_v35 }
 0x451   : > { %v1600_v42 = vpop.xlane.xlu0 %1599 }
 0x452   : > { %v1601_v51 = vmul.f32 0.03125, %v1600_v42 }
 0x454   : > { %v1602_v61 = vadd.f32 1e-05, %v1601_v51 }
 0x456   : > { %2249 = vrsqrt.f32 %v1602_v61 }
 0x460   : > { %v2250_v58 = vpop.eup %2249 }
 0x461   : > { %v1604_v8 = vmul.f32 %v2250_v58, %v1596_v40 }
 0x463   : > { %v1611_v18 = vmul.f32 %v2018_v5, %v1604_v8 }
 0x465   : > { %v1618_v44 = vadd.f32 %v2019_v43, %v1611_v18 }
 0x467   : > { %v1619_v36 = vpack.c.bf16 %v1618_v44, %v1618_v44 }
 0x469   : > { %2117 = vmatmul.mubr.msk.bf16.vlgmr.msra.gmra.mrb[16].mxu0 %vm727_vm1, %v1619_v36 }
 0x53c   : > { %v1680_v50 = vpop.f32.mrb[16].mxu0 }
 0x53d   : > { %v1681_v52 = vadd.f32 %v2020_v38, %v1680_v50  ;;  %v2118_v53 = vpop.f32.mrb[17].mxu0 }
 0x53e   : > { %v1683_v54 = vpop.f32.mrb[18].mxu0 }
 0x53f   : > { %v1686_v55 = vpack.c.bf16 %v1681_v52, %v1681_v52  ;;  %v2119_v56 = vpop.f32.mrb[19].mxu0 }
 0x541   : > { %v1687_v57 = vmul.bf16 %v1686_v55, %v1686_v55 }
 0x543   : > { %v1688_v59 = vmul.bf16 %v1687_v57, %v1686_v55 }
 0x545   : > { %v1689_v60 = vmul.bf16 1027030327, %v1688_v59 }
 0x547   : > { %v1690_v62 = vadd.bf16 %v1689_v60, %v1686_v55 }
 0x549   : > { %v1691_v1 = vmul.bf16 1061961548, %v1690_v62 }
 0x54b   : > { %2251 = vtanh.bf16 %v1691_v1 }
 0x556   : > { %v2252_v31 = vpop.eup %2251 }
 0x557   : > { %v1693_v0 = vadd.bf16 1065369472, %v2252_v31 }
 0x559   : > { %v1694_v34 = vmul.bf16 1056980736, %v1693_v0 }
 0x55b   : > { %v1695_v30 = vmul.bf16 %v1694_v34, %v1686_v55 }
 0x55d   : > { %2137 = vmatmul.mubr.bf16.vlgmr.msra.gmra.mrb[8].mxu1 %v1695_v30 }
 0x630   : > { %v1801_v33 = vpop.f32.mrb[8].mxu1 }
 0x631   : > { %v1802_v3 = vadd.f32 %v2024_v2, %v1801_v33  ;;  %v2138_v4 = vpop.f32.mrb[9].mxu1 }
 0x632   : > { %v1804_v6 = vpop.f32.mrb[10].mxu1 }
 0x633   : > { %v2139_v9 = vpop.f32.mrb[11].mxu1  ;;  %v1807_v10 = vadd.f32 %v1802_v3, %v1618_v44 }
 0x635   : > { %v1810_v12 = vsel %vm727_vm1, %v1807_v10, 0.0 }
 0x636   : > { %1811 = vadd.xlane.f32.xlu0 %v1810_v12 }
 0x6c3   : > { %v1812_v13 = vpop.xlane.xlu0 %1811 }
 0x6c4   : > { %v1813_v14 = vmul.f32 0.03125, %v1812_v13 }
 0x6c6   : > { %v1814_v16 = vsub.f32 %v1807_v10, %v1813_v14 }
 0x6c8   : > { %v1815_v15 = vmul.f32 %v1814_v16, %v1814_v16 }
 0x6ca   : > { %v1816_v19 = vsel %vm727_vm1, %v1815_v15, 0.0 }
 0x6cb   : > { %1817 = vadd.xlane.f32.xlu0 %v1816_v19 }
 0x758   : > { %v1818_v20 = vpop.xlane.xlu0 %1817 }
 0x759   : > { %v1819_v21 = vmul.f32 0.03125, %v1818_v20 }
 0x75b   : > { %v1820_v22 = vadd.f32 1e-05, %v1819_v21 }
 0x75d   : > { %2253 = vrsqrt.f32 %v1820_v22 }
 0x767   : > { %v2254_v23 = vpop.eup %2253 }
 0x768   : > { %v1822_v25 = vmul.f32 %v2254_v23, %v1814_v16 }
 0x76a   : > { %v1829_v27 = vmul.f32 %v2033_v24, %v1822_v25 }
 0x76c   : > { %v1836_v28 = vadd.f32 %v2034_v26, %v1829_v27 }
 0x76e   : > { %v1843_v29 = vmul.f32 %v1841_v17, %v1836_v28 }
 0x770   : > { %1844 = vst.msk [vmem:[%s666_s20] sm:$0xff] %vm727_vm1, %v1843_v29 }
 0x771   : > { %2268 = shalt.err (!%p2265_p6)
}
 0x772   : > { %s2269_s29 = scalar_lea.hbm %s2757_s24, 128  ;;  %s2273_s0 = scalar_lea.hbm %s2824_s19, 512 }
 0x773   : > { %p2270_p7 = scmp.ne.s32.totalorder %s2757_s24, %s2269_s29  ;;  %p2274_p11 = scmp.lt.u32.totalorder %s2757_s24, %s2824_s19 }
 0x774   : > { %p2275_p12 = scmp.lt.u32.totalorder %s2273_s0, %s2269_s29  ;;  %p2277_p0 = scmp.lt.u32.totalorder %s2269_s29, %s2757_s24 }
 0x775   : > { %p2271_p9 = pnand %p2270_p7, %p2480_p4 }
 0x776   : > { %p2276_p13 = por %p2275_p12, %p2274_p11 }
 0x777   : > { %p2272_p10 = pneg %p2271_p9 }
 0x778   : > { %p2278_p1 = por %p2277_p0, %p2276_p13 }
 0x77a   : > { %p2279_p2 = pnand %p2278_p1, %p2272_p10 }
 0x77c   : > { %2282 = shalt.err (!%p2279_p2)
}
 0x77d   : > { %2140 = dma.vmem_to_hbm [thread:$0]  (%p2480_p4), %s2759_s27, 128, %s2757_s24, %s1846_s26  }
 0x77e PF: > { %s2852_s25 = sld [smem:[#allocation8_spill]]  ;;  %p2146_p3 = scmp.ge.s32.totalorder %s2333_s22, 2 }
 0x780   : > { %p2143_p5 = pnand %p2146_p3, %p2487_p8 }
 0x784   : > { %s1871_s21 = sand.u32 1, %s2852_s25  }
 0x785   : > { %s1872_s23 = scalar_lea.sflag [#allocation6], %s1871_s21 }
 0x786   : > { %2308 = dma.done.wait (!%p2143_p5), %s1872_s23, 128  }
 0x787   : > { %2310 = vsyncadd (!%p2143_p5), %s1872_s23, 4294967168  ;;  %s32_s22 = sadd.s32 1, %s2333_s22   ;;  %s2854_s2 = sld [smem:[#allocation9_spill]] }
 0x788   : > { %p29_p6 = scmp.ge.s32.totalorder %s32_s22, 6   ;;  %s2855_s20 = sld [smem:[#allocation13_spill]] }
 0x789   : > { %s2856_s21 = sld [smem:[#allocation10_spill]]  ;;  %s2857_s1 = sld [smem:[#allocation11_spill]] }
 0x78a   : > { %s2858_s0 = smov %s2317_s30  ;;  %31 = sbr.rel (!%p29_p6) target bundleno = 11 (0xb), region = 148 }
 0x78d   : > { %s2859_s30 = smov %s2854_s2 }
 0x791   :  { %1877 = vsyncpa [#allocation6], 1 }
 0x792   :  { %1879 = vsyncpa [#allocation6 + $0x1], 1 }

</bundles_post_ra>
